<compile_context>
chip_gen: v7x
topology: tpu7x:2x2x1
jax: 0.10.0
libtpu: 0.0.40
codegen_flags: <defaults>
</compile_context>

<pallas_src>
import math

import jax
import jax.numpy as jnp
from jax.experimental import pallas as pl
from jax.experimental.pallas import tpu as pltpu


def _round_up(x, m):
    return ((x + m - 1) // m) * m


def _mlp_kernel(x_ref, w1_ref, b1_ref, w2_ref, b2_ref, w3_ref, b3_ref,
                o_ref, h1_ref):
    # Layer 1: Linear + ReLU.  f32 accumulation on the MXU; bias add + ReLU
    # epilogue in f32 (native VALU path on all generations), then a single
    # cast into the compute dtype when staging into VMEM scratch.
    h1 = jnp.dot(x_ref[...], w1_ref[...], preferred_element_type=jnp.float32)
    h1_ref[...] = jnp.maximum(h1 + b1_ref[...], 0.0).astype(h1_ref.dtype)

    # Layer 2: Linear + ReLU.  Scratch is already in the matmul compute dtype,
    # so no cast on reload.  The result is NOT staged — it is cast once and
    # fed straight into the layer-3 dot (saves a full VMEM round trip).
    h2 = jnp.dot(h1_ref[...], w2_ref[...], preferred_element_type=jnp.float32)
    h2 = jnp.maximum(h2 + b2_ref[...], 0.0).astype(w3_ref.dtype)

    # Layer 3: Linear (no activation).  Output columns are zero-padded to a
    # lane-dense 128-wide slab so stores are unmasked vst; the wrapper slices
    # back to out_dim unless return_padded=True.
    out = jnp.dot(h2, w3_ref[...], preferred_element_type=jnp.float32)
    o_ref[...] = (out + b3_ref[...]).astype(o_ref.dtype)


def prepare_params(params, *, compute_dtype=None):
    """One-time parameter preparation (call once, reuse across forward calls).

    * Pads w3/b3 to a 128-lane output slab (lane-dense, unmasked stores).
    * Casts matmul weights to `compute_dtype` (bf16 recommended on v5e, v6e
      AND v7x: the MXU is bf16-native on all of them, and it halves weight
      DMA bytes).  Biases stay f32 so the bias/ReLU epilogue runs on the f32
      VALU path everywhere (v5e has no bf16 VPU).
    Doing this once avoids per-forward-call pad/cast XLA ops.
    """
    w1, b1, w2, b2, w3, b3 = (params[k] for k in ("w1", "b1", "w2", "b2", "w3", "b3"))
    out_dim = w3.shape[1]
    out_p = max(_round_up(out_dim, 128), 128)
    if out_p != out_dim:
        w3 = jnp.pad(w3, ((0, 0), (0, out_p - out_dim)))
        b3 = jnp.pad(b3, ((0, 0), (0, out_p - out_dim)))
    cdt = jnp.float32 if compute_dtype is None else compute_dtype
    w1, w2, w3 = (w.astype(cdt) for w in (w1, w2, w3))
    b1, b2, b3 = (b.astype(jnp.float32) for b in (b1, b2, b3))
    return {"w1": w1, "b1": b1, "w2": w2, "b2": b2, "w3": w3, "b3": b3,
            "out_dim": out_dim, "compute_dtype": cdt}


def feedforward_nn(x, prepared, *, tile_b=256, out_dtype=jnp.float32,
                   return_padded=False):
    """Forward pass of the 3-layer MLP.

    x:             (B, in_dim) array
    prepared:      output of prepare_params()
    tile_b:        batch tile.  Default 256; sweep 512-1024 on single-TC
                   v5e/v6e (fewer, bigger steps win); on v7x prefer a tile
                   that keeps the step count even so both TensorCores get
                   balanced work via dimension_semantics=("parallel",).
    out_dtype:     output dtype (bf16 halves the padded-slab writeback when
                   downstream precision allows).
    return_padded: return the (B_pad, 128) lane-dense slab directly, skipping
                   the trailing slice (an extra HBM read of the whole slab).
    """
    w1, b1, w2, b2, w3, b3 = (prepared[k] for k in ("w1", "b1", "w2", "b2", "w3", "b3"))
    out_dim = prepared["out_dim"]
    cdt = prepared["compute_dtype"]

    B, in_dim = x.shape
    hidden = w1.shape[1]
    out_p = w3.shape[1]

    x = x.astype(cdt)

    # ---- batch tiling.  Sub-32-bit dtypes pack rows along sublanes, so align
    # the tile to 16 rows for bf16 / 32 for fp8-int8 (8 for f32).
    itemsize = jnp.dtype(cdt).itemsize
    o_itemsize = jnp.dtype(out_dtype).itemsize
    sub_align = max(8, 32 // itemsize)
    tile_b = max(sub_align,
                 _round_up(min(tile_b, _round_up(B, sub_align)), sub_align))
    B_pad = _round_up(B, tile_b)
    if B_pad != B:
        x = jnp.pad(x, ((0, B_pad - B), (0, 0)))
    grid = (B_pad // tile_b,)

    # ---- VMEM budget: single-buffered resident weights/biases, double-
    # buffered x/out tiles, one compute-dtype activation scratch.
    w_bytes = (in_dim * hidden + hidden * hidden + hidden * out_p) * itemsize
    b_bytes = (2 * hidden + out_p) * 4
    io_bytes = tile_b * (in_dim * itemsize + out_p * o_itemsize)
    scratch_bytes = tile_b * hidden * itemsize
    vmem_est = (w_bytes + b_bytes) + 2 * io_bytes + scratch_bytes

    # Generation-aware ceiling with ~20% headroom for Mosaic internal scratch:
    # ~51 MiB on v7x (64 MiB physical / TC), ~102 MiB on v5e/v6e (128 MiB).
    try:
        vmem_cap = int(pltpu.get_tpu_info().vmem_capacity_bytes)
    except Exception:
        vmem_cap = 128 * 2**20
    vmem_ceiling = int(vmem_cap * 0.8)
    vmem_limit = int(min(vmem_ceiling, max(16 * 2**20, int(vmem_est * 1.5))))

    # ---- advisory cost estimate for XLA scheduling around the custom call.
    flops = 2 * B_pad * (in_dim * hidden + hidden * hidden + hidden * out_p)
    bytes_accessed = int(B_pad * in_dim * itemsize + w_bytes + b_bytes
                         + B_pad * out_p * o_itemsize)
    cost = pl.CostEstimate(flops=flops, transcendentals=0,
                           bytes_accessed=bytes_accessed)

    def _call(single_buffer_weights):
        def resident(shape):
            # Constant index_map => same (only) block every step; the data
            # stays resident, so a single pipeline buffer suffices.
            idx = lambda i, _n=len(shape): (0,) * _n
            if single_buffer_weights:
                return pl.BlockSpec(shape, idx, pipeline_mode=pl.Buffered(1))
            return pl.BlockSpec(shape, idx)

        return pl.pallas_call(
            _mlp_kernel,
            out_shape=jax.ShapeDtypeStruct((B_pad, out_p), out_dtype),
            grid_spec=pltpu.PrefetchScalarGridSpec(
                num_scalar_prefetch=0,
                grid=grid,
                in_specs=[
                    pl.BlockSpec((tile_b, in_dim), lambda i: (i, 0)),  # x tile
                    resident((in_dim, hidden)),                        # w1
                    resident((1, hidden)),                             # b1
                    resident((hidden, hidden)),                        # w2
                    resident((1, hidden)),                             # b2
                    resident((hidden, out_p)),                         # w3 (padded)
                    resident((1, out_p)),                              # b3 (padded)
                ],
                out_specs=pl.BlockSpec((tile_b, out_p), lambda i: (i, 0)),
                scratch_shapes=[pltpu.VMEM((tile_b, hidden), cdt)],    # h1
            ),
            compiler_params=pltpu.CompilerParams(
                dimension_semantics=("parallel",),   # batch tiles shard across v7x TCs
                vmem_limit_bytes=vmem_limit,
            ),
            cost_estimate=cost,
        )(x, w1, b1, w2, b2, w3, b3)

    try:
        out = _call(True)          # single-buffered resident weights
    except Exception:
        out = _call(False)         # fallback: default (double) buffering

    if return_padded:
        return out
    return out[:B, :out_dim]


def init_params(key, in_dim, out_dim, hidden_dim=128, dtype=jnp.float32):
    """Deterministic init mimicking torch.nn.Linear default (U(-1/sqrt(fan_in), +))."""
    ks = jax.random.split(key, 6)

    def linear(kw, kb, fan_in, fan_out):
        bound = 1.0 / math.sqrt(fan_in)
        w = jax.random.uniform(kw, (fan_in, fan_out), dtype, -bound, bound)
        b = jax.random.uniform(kb, (1, fan_out), dtype, -bound, bound)
        return w, b

    w1, b1 = linear(ks[0], ks[1], in_dim, hidden_dim)
    w2, b2 = linear(ks[2], ks[3], hidden_dim, hidden_dim)
    w3, b3 = linear(ks[4], ks[5], hidden_dim, out_dim)
    return {"w1": w1, "b1": b1, "w2": w2, "b2": b2, "w3": w3, "b3": b3}


if __name__ == "__main__":
    key = jax.random.PRNGKey(0)
    k_params, k_x = jax.random.split(key)

    # hidden_dim=128 matches the module default; B=500 exercises batch padding
    # and gives a 2-step (even) grid: pipelining + balanced megacore split on v7x.
    B, in_dim, hidden_dim, out_dim = 500, 16, 128, 4

    params = init_params(k_params, in_dim, out_dim, hidden_dim)
    x = jax.random.normal(k_x, (B, in_dim), dtype=jnp.float32)

    # ---- f32 path: strict check against the pure-JAX reference.
    prep_f32 = prepare_params(params)                       # one-time pad/cast
    out = jax.block_until_ready(feedforward_nn(x, prep_f32, tile_b=256))
    ref = jnp.maximum(x @ params["w1"] + params["b1"], 0.0)
    ref = jnp.maximum(ref @ params["w2"] + params["b2"], 0.0)
    ref = ref @ params["w3"] + params["b3"]
    assert out.shape == (B, out_dim)
    assert jnp.allclose(out, ref, atol=1e-4, rtol=1e-4), \
        float(jnp.max(jnp.abs(out - ref)))

    # ---- bf16 matmul-input path (recommended on v5e, v6e and v7x): check
    # against the identically-cast pure-JAX reference (f32 accumulation both).
    prep_bf16 = prepare_params(params, compute_dtype=jnp.bfloat16)
    out_bf16 = jax.block_until_ready(feedforward_nn(x, prep_bf16, tile_b=256))
    xb = x.astype(jnp.bfloat16)
    rb = jnp.maximum(
        jnp.dot(xb, params["w1"].astype(jnp.bfloat16),
                preferred_element_type=jnp.float32) + params["b1"], 0.0)
    rb = jnp.maximum(
        jnp.dot(rb.astype(jnp.bfloat16), params["w2"].astype(jnp.bfloat16),
                preferred_element_type=jnp.float32) + params["b2"], 0.0)
    rb = jnp.dot(rb.astype(jnp.bfloat16), params["w3"].astype(jnp.bfloat16),
                 preferred_element_type=jnp.float32) + params["b3"]
    assert out_bf16.shape == (B, out_dim)
    assert jnp.allclose(out_bf16, rb, atol=1e-2, rtol=1e-2), \
        float(jnp.max(jnp.abs(out_bf16 - rb)))

    # TODO(synk): get_distribution (Normal(logits, log_std.exp())) and the Adam
    # optimizer are sampling/training utilities outside forward(); not kernels.
    print("KERNEL_OK")
</pallas_src>

<mosaic_0001>
module attributes {stable_mosaic.version = 11 : i64} {
  func.func @_mlp_kernel(%arg0: i32, %arg1: memref<256x16xf32, #tpu.memory_space<vmem>>, %arg2: memref<16x128xf32, #tpu.memory_space<vmem>>, %arg3: memref<1x128xf32, #tpu.memory_space<vmem>>, %arg4: memref<128x128xf32, #tpu.memory_space<vmem>>, %arg5: memref<1x128xf32, #tpu.memory_space<vmem>>, %arg6: memref<128x128xf32, #tpu.memory_space<vmem>>, %arg7: memref<1x128xf32, #tpu.memory_space<vmem>>, %arg8: memref<256x128xf32, #tpu.memory_space<vmem>>, %arg9: memref<256x128xf32, #tpu.memory_space<vmem>>) attributes {dimension_semantics = [#tpu.dimension_semantics<parallel>], iteration_bounds = array<i64: 2>, scalar_prefetch = 0 : i64, scratch_operands = 1 : i64, tpu.core_type = #tpu.core_type<tc>, window_params = [{transform_indices = @transform_0, window_bounds = array<i64: 256, 16>}, {pipeline_mode = #tpu.pipeline_mode<synchronous>, transform_indices = @transform_1, window_bounds = array<i64: 16, 128>}, {pipeline_mode = #tpu.pipeline_mode<synchronous>, transform_indices = @transform_2, window_bounds = array<i64: 1, 128>}, {pipeline_mode = #tpu.pipeline_mode<synchronous>, transform_indices = @transform_3, window_bounds = array<i64: 128, 128>}, {pipeline_mode = #tpu.pipeline_mode<synchronous>, transform_indices = @transform_4, window_bounds = array<i64: 1, 128>}, {pipeline_mode = #tpu.pipeline_mode<synchronous>, transform_indices = @transform_5, window_bounds = array<i64: 128, 128>}, {pipeline_mode = #tpu.pipeline_mode<synchronous>, transform_indices = @transform_6, window_bounds = array<i64: 1, 128>}, {transform_indices = @transform_7, window_bounds = array<i64: 256, 128>}]} {
    %c0 = arith.constant 0 : index
    %c0_0 = arith.constant 0 : index
    %0 = vector.load %arg1[%c0, %c0_0] : memref<256x16xf32, #tpu.memory_space<vmem>>, vector<256x16xf32>
    %c0_1 = arith.constant 0 : index
    %c0_2 = arith.constant 0 : index
    %1 = vector.load %arg2[%c0_1, %c0_2] : memref<16x128xf32, #tpu.memory_space<vmem>>, vector<16x128xf32>
    %cst = arith.constant dense<0.000000e+00> : vector<256x128xf32>
    %2 = tpu.matmul %0, %1, %cst {dimension_numbers = #tpu.dot_dimension_numbers<[1], [0], [0], [1], [0, 0, 1, 1], [], []>} : vector<256x16xf32>, vector<16x128xf32>, vector<256x128xf32> -> vector<256x128xf32>
    %c0_3 = arith.constant 0 : index
    %c0_4 = arith.constant 0 : index
    %3 = vector.load %arg3[%c0_3, %c0_4] : memref<1x128xf32, #tpu.memory_space<vmem>>, vector<1x128xf32>
    %4 = vector.broadcast %3 : vector<1x128xf32> to vector<256x128xf32>
    %5 = arith.addf %2, %4 : vector<256x128xf32>
    %cst_5 = arith.constant 0.000000e+00 : f32
    %6 = vector.broadcast %cst_5 : f32 to vector<256x128xf32>
    %7 = arith.maximumf %5, %6 : vector<256x128xf32>
    %c0_6 = arith.constant 0 : index
    %c0_7 = arith.constant 0 : index
    %8 = vector.load %arg9[%c0_6, %c0_7] : memref<256x128xf32, #tpu.memory_space<vmem>>, vector<256x128xf32>
    tpu.vector_store %arg9[%c0_6, %c0_7], %7 {strides = array<i32>} : memref<256x128xf32, #tpu.memory_space<vmem>>, vector<256x128xf32>,
    %c0_8 = arith.constant 0 : index
    %c0_9 = arith.constant 0 : index
    %9 = vector.load %arg9[%c0_8, %c0_9] : memref<256x128xf32, #tpu.memory_space<vmem>>, vector<256x128xf32>
    %c0_10 = arith.constant 0 : index
    %c0_11 = arith.constant 0 : index
    %10 = vector.load %arg4[%c0_10, %c0_11] : memref<128x128xf32, #tpu.memory_space<vmem>>, vector<128x128xf32>
    %cst_12 = arith.constant dense<0.000000e+00> : vector<256x128xf32>
    %11 = tpu.matmul %9, %10, %cst_12 {dimension_numbers = #tpu.dot_dimension_numbers<[1], [0], [0], [1], [0, 0, 1, 1], [], []>} : vector<256x128xf32>, vector<128x128xf32>, vector<256x128xf32> -> vector<256x128xf32>
    %c0_13 = arith.constant 0 : index
    %c0_14 = arith.constant 0 : index
    %12 = vector.load %arg5[%c0_13, %c0_14] : memref<1x128xf32, #tpu.memory_space<vmem>>, vector<1x128xf32>
    %13 = vector.broadcast %12 : vector<1x128xf32> to vector<256x128xf32>
    %14 = arith.addf %11, %13 : vector<256x128xf32>
    %cst_15 = arith.constant 0.000000e+00 : f32
    %15 = vector.broadcast %cst_15 : f32 to vector<256x128xf32>
    %16 = arith.maximumf %14, %15 : vector<256x128xf32>
    %c0_16 = arith.constant 0 : index
    %c0_17 = arith.constant 0 : index
    %17 = vector.load %arg6[%c0_16, %c0_17] : memref<128x128xf32, #tpu.memory_space<vmem>>, vector<128x128xf32>
    %cst_18 = arith.constant dense<0.000000e+00> : vector<256x128xf32>
    %18 = tpu.matmul %16, %17, %cst_18 {dimension_numbers = #tpu.dot_dimension_numbers<[1], [0], [0], [1], [0, 0, 1, 1], [], []>} : vector<256x128xf32>, vector<128x128xf32>, vector<256x128xf32> -> vector<256x128xf32>
    %c0_19 = arith.constant 0 : index
    %c0_20 = arith.constant 0 : index
    %19 = vector.load %arg7[%c0_19, %c0_20] : memref<1x128xf32, #tpu.memory_space<vmem>>, vector<1x128xf32>
    %20 = vector.broadcast %19 : vector<1x128xf32> to vector<256x128xf32>
    %21 = arith.addf %18, %20 : vector<256x128xf32>
    %c0_21 = arith.constant 0 : index
    %c0_22 = arith.constant 0 : index
    %22 = vector.load %arg8[%c0_21, %c0_22] : memref<256x128xf32, #tpu.memory_space<vmem>>, vector<256x128xf32>
    tpu.vector_store %arg8[%c0_21, %c0_22], %21 {strides = array<i32>} : memref<256x128xf32, #tpu.memory_space<vmem>>, vector<256x128xf32>,
    return
  }
  func.func @transform_0(%arg0: i32) -> (i32, i32) {
    %c0_i32 = arith.constant 0 : i32
    %c0_i32_0 = arith.constant 0 : i32
    return %arg0, %c0_i32 : i32, i32
  }
  func.func @transform_1(%arg0: i32) -> (i32, i32) {
    %c0_i32 = arith.constant 0 : i32
    %c0_i32_0 = arith.constant 0 : i32
    %c0_i32_1 = arith.constant 0 : i32
    return %c0_i32, %c0_i32_0 : i32, i32
  }
  func.func @transform_2(%arg0: i32) -> (i32, i32) {
    %c0_i32 = arith.constant 0 : i32
    %c0_i32_0 = arith.constant 0 : i32
    %c0_i32_1 = arith.constant 0 : i32
    return %c0_i32, %c0_i32_0 : i32, i32
  }
  func.func @transform_3(%arg0: i32) -> (i32, i32) {
    %c0_i32 = arith.constant 0 : i32
    %c0_i32_0 = arith.constant 0 : i32
    %c0_i32_1 = arith.constant 0 : i32
    return %c0_i32, %c0_i32_0 : i32, i32
  }
  func.func @transform_4(%arg0: i32) -> (i32, i32) {
    %c0_i32 = arith.constant 0 : i32
    %c0_i32_0 = arith.constant 0 : i32
    %c0_i32_1 = arith.constant 0 : i32
    return %c0_i32, %c0_i32_0 : i32, i32
  }
  func.func @transform_5(%arg0: i32) -> (i32, i32) {
    %c0_i32 = arith.constant 0 : i32
    %c0_i32_0 = arith.constant 0 : i32
    %c0_i32_1 = arith.constant 0 : i32
    return %c0_i32, %c0_i32_0 : i32, i32
  }
  func.func @transform_6(%arg0: i32) -> (i32, i32) {
    %c0_i32 = arith.constant 0 : i32
    %c0_i32_0 = arith.constant 0 : i32
    %c0_i32_1 = arith.constant 0 : i32
    return %c0_i32, %c0_i32_0 : i32, i32
  }
  func.func @transform_7(%arg0: i32) -> (i32, i32) {
    %c0_i32 = arith.constant 0 : i32
    %c0_i32_0 = arith.constant 0 : i32
    return %arg0, %c0_i32 : i32, i32
  }
}

module attributes {stable_mosaic.version = 11 : i64} {
  func.func @_mlp_kernel(%arg0: i32, %arg1: memref<256x16xf32, #tpu.memory_space<vmem>>, %arg2: memref<16x128xf32, #tpu.memory_space<vmem>>, %arg3: memref<1x128xf32, #tpu.memory_space<vmem>>, %arg4: memref<128x128xf32, #tpu.memory_space<vmem>>, %arg5: memref<1x128xf32, #tpu.memory_space<vmem>>, %arg6: memref<128x128xf32, #tpu.memory_space<vmem>>, %arg7: memref<1x128xf32, #tpu.memory_space<vmem>>, %arg8: memref<256x128xf32, #tpu.memory_space<vmem>>, %arg9: memref<256x128xf32, #tpu.memory_space<vmem>>) attributes {dimension_semantics = [#tpu.dimension_semantics<parallel>], iteration_bounds = array<i64: 2>, scalar_prefetch = 0 : i64, scratch_operands = 1 : i64, tpu.core_type = #tpu.core_type<tc>, window_params = [{transform_indices = @transform_0, window_bounds = array<i64: 256, 16>}, {pipeline_mode = #tpu.pipeline_mode<synchronous>, transform_indices = @transform_1, window_bounds = array<i64: 16, 128>}, {pipeline_mode = #tpu.pipeline_mode<synchronous>, transform_indices = @transform_2, window_bounds = array<i64: 1, 128>}, {pipeline_mode = #tpu.pipeline_mode<synchronous>, transform_indices = @transform_3, window_bounds = array<i64: 128, 128>}, {pipeline_mode = #tpu.pipeline_mode<synchronous>, transform_indices = @transform_4, window_bounds = array<i64: 1, 128>}, {pipeline_mode = #tpu.pipeline_mode<synchronous>, transform_indices = @transform_5, window_bounds = array<i64: 128, 128>}, {pipeline_mode = #tpu.pipeline_mode<synchronous>, transform_indices = @transform_6, window_bounds = array<i64: 1, 128>}, {transform_indices = @transform_7, window_bounds = array<i64: 256, 128>}]} {
    %c0 = arith.constant 0 : index
    %c0_0 = arith.constant 0 : index
    %0 = vector.load %arg1[%c0, %c0_0] : memref<256x16xf32, #tpu.memory_space<vmem>>, vector<256x16xf32>
    %c0_1 = arith.constant 0 : index
    %c0_2 = arith.constant 0 : index
    %1 = vector.load %arg2[%c0_1, %c0_2] : memref<16x128xf32, #tpu.memory_space<vmem>>, vector<16x128xf32>
    %cst = arith.constant dense<0.000000e+00> : vector<256x128xf32>
    %2 = tpu.matmul %0, %1, %cst {dimension_numbers = #tpu.dot_dimension_numbers<[1], [0], [0], [1], [0, 0, 1, 1], [], []>} : vector<256x16xf32>, vector<16x128xf32>, vector<256x128xf32> -> vector<256x128xf32>
    %c0_3 = arith.constant 0 : index
    %c0_4 = arith.constant 0 : index
    %3 = vector.load %arg3[%c0_3, %c0_4] : memref<1x128xf32, #tpu.memory_space<vmem>>, vector<1x128xf32>
    %4 = vector.broadcast %3 : vector<1x128xf32> to vector<256x128xf32>
    %5 = arith.addf %2, %4 : vector<256x128xf32>
    %cst_5 = arith.constant 0.000000e+00 : f32
    %6 = vector.broadcast %cst_5 : f32 to vector<256x128xf32>
    %7 = arith.maximumf %5, %6 : vector<256x128xf32>
    %c0_6 = arith.constant 0 : index
    %c0_7 = arith.constant 0 : index
    %8 = vector.load %arg9[%c0_6, %c0_7] : memref<256x128xf32, #tpu.memory_space<vmem>>, vector<256x128xf32>
    tpu.vector_store %arg9[%c0_6, %c0_7], %7 {strides = array<i32>} : memref<256x128xf32, #tpu.memory_space<vmem>>, vector<256x128xf32>,
    %c0_8 = arith.constant 0 : index
    %c0_9 = arith.constant 0 : index
    %9 = vector.load %arg9[%c0_8, %c0_9] : memref<256x128xf32, #tpu.memory_space<vmem>>, vector<256x128xf32>
    %c0_10 = arith.constant 0 : index
    %c0_11 = arith.constant 0 : index
    %10 = vector.load %arg4[%c0_10, %c0_11] : memref<128x128xf32, #tpu.memory_space<vmem>>, vector<128x128xf32>
    %cst_12 = arith.constant dense<0.000000e+00> : vector<256x128xf32>
    %11 = tpu.matmul %9, %10, %cst_12 {dimension_numbers = #tpu.dot_dimension_numbers<[1], [0], [0], [1], [0, 0, 1, 1], [], []>} : vector<256x128xf32>, vector<128x128xf32>, vector<256x128xf32> -> vector<256x128xf32>
    %c0_13 = arith.constant 0 : index
    %c0_14 = arith.constant 0 : index
    %12 = vector.load %arg5[%c0_13, %c0_14] : memref<1x128xf32, #tpu.memory_space<vmem>>, vector<1x128xf32>
    %13 = vector.broadcast %12 : vector<1x128xf32> to vector<256x128xf32>
    %14 = arith.addf %11, %13 : vector<256x128xf32>
    %cst_15 = arith.constant 0.000000e+00 : f32
    %15 = vector.broadcast %cst_15 : f32 to vector<256x128xf32>
    %16 = arith.maximumf %14, %15 : vector<256x128xf32>
    %c0_16 = arith.constant 0 : index
    %c0_17 = arith.constant 0 : index
    %17 = vector.load %arg6[%c0_16, %c0_17] : memref<128x128xf32, #tpu.memory_space<vmem>>, vector<128x128xf32>
    %cst_18 = arith.constant dense<0.000000e+00> : vector<256x128xf32>
    %18 = tpu.matmul %16, %17, %cst_18 {dimension_numbers = #tpu.dot_dimension_numbers<[1], [0], [0], [1], [0, 0, 1, 1], [], []>} : vector<256x128xf32>, vector<128x128xf32>, vector<256x128xf32> -> vector<256x128xf32>
    %c0_19 = arith.constant 0 : index
    %c0_20 = arith.constant 0 : index
    %19 = vector.load %arg7[%c0_19, %c0_20] : memref<1x128xf32, #tpu.memory_space<vmem>>, vector<1x128xf32>
    %20 = vector.broadcast %19 : vector<1x128xf32> to vector<256x128xf32>
    %21 = arith.addf %18, %20 : vector<256x128xf32>
    %c0_21 = arith.constant 0 : index
    %c0_22 = arith.constant 0 : index
    %22 = vector.load %arg8[%c0_21, %c0_22] : memref<256x128xf32, #tpu.memory_space<vmem>>, vector<256x128xf32>
    tpu.vector_store %arg8[%c0_21, %c0_22], %21 {strides = array<i32>} : memref<256x128xf32, #tpu.memory_space<vmem>>, vector<256x128xf32>,
    return
  }
  func.func @transform_0(%arg0: i32) -> (i32, i32) {
    %c0_i32 = arith.constant 0 : i32
    %c0_i32_0 = arith.constant 0 : i32
    return %arg0, %c0_i32 : i32, i32
  }
  func.func @transform_1(%arg0: i32) -> (i32, i32) {
    %c0_i32 = arith.constant 0 : i32
    %c0_i32_0 = arith.constant 0 : i32
    %c0_i32_1 = arith.constant 0 : i32
    return %c0_i32, %c0_i32_0 : i32, i32
  }
  func.func @transform_2(%arg0: i32) -> (i32, i32) {
    %c0_i32 = arith.constant 0 : i32
    %c0_i32_0 = arith.constant 0 : i32
    %c0_i32_1 = arith.constant 0 : i32
    return %c0_i32, %c0_i32_0 : i32, i32
  }
  func.func @transform_3(%arg0: i32) -> (i32, i32) {
    %c0_i32 = arith.constant 0 : i32
    %c0_i32_0 = arith.constant 0 : i32
    %c0_i32_1 = arith.constant 0 : i32
    return %c0_i32, %c0_i32_0 : i32, i32
  }
  func.func @transform_4(%arg0: i32) -> (i32, i32) {
    %c0_i32 = arith.constant 0 : i32
    %c0_i32_0 = arith.constant 0 : i32
    %c0_i32_1 = arith.constant 0 : i32
    return %c0_i32, %c0_i32_0 : i32, i32
  }
  func.func @transform_5(%arg0: i32) -> (i32, i32) {
    %c0_i32 = arith.constant 0 : i32
    %c0_i32_0 = arith.constant 0 : i32
    %c0_i32_1 = arith.constant 0 : i32
    return %c0_i32, %c0_i32_0 : i32, i32
  }
  func.func @transform_6(%arg0: i32) -> (i32, i32) {
    %c0_i32 = arith.constant 0 : i32
    %c0_i32_0 = arith.constant 0 : i32
    %c0_i32_1 = arith.constant 0 : i32
    return %c0_i32, %c0_i32_0 : i32, i32
  }
  func.func @transform_7(%arg0: i32) -> (i32, i32) {
    %c0_i32 = arith.constant 0 : i32
    %c0_i32_0 = arith.constant 0 : i32
    return %arg0, %c0_i32 : i32, i32
  }
}

</mosaic_0001>

<bundles_post_ra>
// kernel: tpu_custom_call.1
= control target key start
LH: loop header
LB: loop body
LE: loop exit
PB: predicated region body
PF: predicated region fallthrough
CT: control target
= control target key end

     0   :  { %12 = vsyncpa [#allocation4], 0  ;;  %s2412_s0 = inlined_call_operand.vmem [shape: f32[512,16], index: 0, kind: input, shape index: {}]   ;;  %s2413_s1 = inlined_call_operand.vmem [shape: f32[16,128], index: 1, kind: input, shape index: {}]   ;;  %s2414_s2 = inlined_call_operand.vmem [shape: f32[1,128], index: 2, kind: input, shape index: {}]   ;;  %s2415_s3 = inlined_call_operand.vmem [shape: f32[128,128], index: 3, kind: input, shape index: {}]   ;;  %s2416_s4 = inlined_call_operand.vmem [shape: f32[1,128], index: 4, kind: input, shape index: {}]   ;;  %s2417_s5 = inlined_call_operand.vmem [shape: f32[128,128], index: 5, kind: input, shape index: {}]   ;;  %s2418_s6 = inlined_call_operand.vmem [shape: f32[1,128], index: 6, kind: input, shape index: {}]   ;;  %s2419_s7 = inlined_call_operand.hbm [shape: f32[512,128], index: 7, kind: output, shape index: {}]  }
   0x1   :  { %14 = vsyncpa [#allocation4 + $0x1], 0  ;;  %s1983_s24 = smov 0   ;;  %s1985_s25 = smov 0  }
   0x2   :  { %s1987_s26 = smov 0   ;;  %s1989_s27 = smov 0  }
   0x3 LB: > { %s2004_s28 = sadd.s32 4294967295, %s1938_s27   ;;  %s1375_s29 = sadd.s32 4294967294, %s1938_s27   ;;  %s1938_s27 = sphi %s1989_s27, %s2425_s27   ;;  %s1934_s26 = sphi %s1987_s26, %s2424_s26   ;;  %s1930_s25 = sphi %s1985_s25, %s2423_s25   ;;  %s1926_s24 = sphi %s1983_s24, %s2422_s24  }
   0x4   : > { %s2008_s30 = sadd.s32 1, %s1938_s27   ;;  %s179_s8 = sadd.s32 1, %s1934_s26 }
   0x5   : > { %s176_s9 = ssub.s32 %s1938_s27, %s2008_s30  ;;  %p189_p0 = scmp.ne.s32.totalorder %s1934_s26, %s1930_s25 }
   0x6   : > { %p177_p1 = scmp.eq.s32.totalorder %s176_s9, 0  ;;  %p190_p2 = scmp.eq.s32.totalorder %s2004_s28, 1 }
   0x7   : > { %p195_p3 = scmp.ne.s32.totalorder %s1930_s25, %s1926_s24  ;;  %p196_p4 = scmp.eq.s32.totalorder %s1375_s29, 1 }
   0x8   : > { %s2019_s10 = scalar_select %p177_p1, %s1934_s26, %s179_s8  }
   0x9   : > { %p2021_p5 = por %p190_p2, %p189_p0  ;;  %p2025_p6 = por %p196_p4, %p195_p3 }
   0xa   : > { %p1378_p7 = scmp.ge.s32.totalorder %s1938_s27, 1  ;;  %p241_p8 = scmp.lt.s32.totalorder %s1938_s27, 3 }
   0xc   : > { %p242_p9 = pnand %p1378_p7, %p241_p8 }
   0xd   : > { %v312_v0 = vld [vmem:[%s2413_s1] sm:$0xff] (!%p242_p9)  ;;  %v313_v1 = vld [vmem:[%s2413_s1 + $0x8] sm:$0xff] (!%p242_p9)  ;;  %s1380_s17 = sshll.u32 (!%p242_p9), %s2004_s28, 5  ;;  %vm321_vm0 = vcmask (!%p242_p9), 130048   ;;  %v741_v9 = vld [vmem:[%s2415_s3 + $0x10] sm:$0xff] (!%p242_p9)  ;;  %s270_s21 = sand.u32 (!%p242_p9), 1, %s1930_s25  }
   0xe   : > { %245 = sbr.rel (%p242_p9) target bundleno = 752 (0x2f0), region = 48  ;;  %v739_v2 = vld [vmem:[%s2415_s3] sm:$0xff] (!%p242_p9)  ;;  %v1765_v3 = vpack.c.bf16 (!%p242_p9), %v313_v1, %v312_v0  ;;  %p274_p10 = scmp.lt.s32.totalorder (!%p242_p9), %s1380_s17, 63  ;;  %v740_v4 = vld [vmem:[%s2415_s3 + $0x8] sm:$0xff] (!%p242_p9)  ;;  %v742_v10 = vld [vmem:[%s2415_s3 + $0x18] sm:$0xff] (!%p242_p9) }
   0xf   : > { %v1769_v5 = vpack.c.bf16 (!%p242_p9), %v740_v4, %v739_v2  ;;  %v1773_v15 = vpack.c.bf16 (!%p242_p9), %v742_v10, %v741_v9  ;;  %v743_v17 = vld [vmem:[%s2415_s3 + $0x20] sm:$0xff] (!%p242_p9)  ;;  %v744_v18 = vld [vmem:[%s2415_s3 + $0x28] sm:$0xff] (!%p242_p9)  ;;  %v745_v24 = vld [vmem:[%s2415_s3 + $0x30] sm:$0xff] (!%p242_p9)  ;;  %s1422_s13 = sshll.u32 (!%p242_p9), %s2004_s28, 12  ;;  %s2371_s28 = scalar_lea.sflag (!%p242_p9), [#allocation4], %s270_s21 }
  0x10   : > { %1766 = vmatprep.subr.bf16.mxu0 (!%p242_p9), %v1765_v3  ;;  %1833 = vmatprep.subr.bf16.mxu1 (!%p242_p9), %v1765_v3  ;;  %v1777_v23 = vpack.c.bf16 (!%p242_p9), %v744_v18, %v743_v17  ;;  %v746_v25 = vld [vmem:[%s2415_s3 + $0x38] sm:$0xff] (!%p242_p9)  ;;  %v747_v31 = vld [vmem:[%s2415_s3 + $0x40] sm:$0xff] (!%p242_p9)  ;;  %v748_v32 = vld [vmem:[%s2415_s3 + $0x48] sm:$0xff] (!%p242_p9)  ;;  %s1940_s18 = smov (!%p242_p9), [#allocation3]  }
  0x11   : > { %1768 = vmatpush3.bf16.msra.mxu0 (!%p242_p9), %v1765_v3  ;;  %1834 = vmatpush3.bf16.msra.mxu1 (!%p242_p9), %v1765_v3  ;;  %v1781_v30 = vpack.c.bf16 (!%p242_p9), %v746_v25, %v745_v24  ;;  %v1785_v37 = vpack.c.bf16 (!%p242_p9), %v748_v32, %v747_v31  ;;  %v749_v38 = vld [vmem:[%s2415_s3 + $0x50] sm:$0xff] (!%p242_p9)  ;;  %v750_v39 = vld [vmem:[%s2415_s3 + $0x58] sm:$0xff] (!%p242_p9)  ;;  %v751_v45 = vld [vmem:[%s2415_s3 + $0x60] sm:$0xff] (!%p242_p9)  ;;  %s1880_s19 = sshll.u32 (!%p242_p9), %s1940_s18, 4  ;;  %s1881_s19 = int_to_ptr.vmem [resolvable:$false] %s1880_s19 }
  0x12   : > { %1770 = vmatprep.subr.bf16.mxu1 (!%p242_p9), %v1769_v5  ;;  %v1789_v44 = vpack.c.bf16 (!%p242_p9), %v750_v39, %v749_v38  ;;  %v752_v46 = vld [vmem:[%s2415_s3 + $0x68] sm:$0xff] (!%p242_p9)  ;;  %v753_v56 = vld [vmem:[%s2415_s3 + $0x70] sm:$0xff] (!%p242_p9)  ;;  %v754_v57 = vld [vmem:[%s2415_s3 + $0x78] sm:$0xff] (!%p242_p9)  ;;  %s1882_s20 = scalar_lea.vmem (!%p242_p9), %s1881_s19, 8192 }
  0x13   : > { %v1793_v51 = vpack.c.bf16 (!%p242_p9), %v752_v46, %v751_v45  ;;  %v1797_v58 = vpack.c.bf16 (!%p242_p9), %v754_v57, %v753_v56  ;;  %v1019_v59 = vld [vmem:[%s2417_s5] sm:$0xff] (!%p242_p9)  ;;  %v1020_v60 = vld [vmem:[%s2417_s5 + $0x8] sm:$0xff] (!%p242_p9)  ;;  %v1021_v61 = vld [vmem:[%s2417_s5 + $0x10] sm:$0xff] (!%p242_p9) }
  0x14   : > { %v1801_v62 = vpack.c.bf16 (!%p242_p9), %v1020_v60, %v1019_v59  ;;  %v1022_v63 = vld [vmem:[%s2417_s5 + $0x18] sm:$0xff] (!%p242_p9)  ;;  %v1023_v1 = vld [vmem:[%s2417_s5 + $0x20] sm:$0xff] (!%p242_p9)  ;;  %v1024_v2 = vld [vmem:[%s2417_s5 + $0x28] sm:$0xff] (!%p242_p9) }
  0x15   : > { %s2427_s17 = smov (!%p274_p10, %s1380_s17), 63  ;;  %v1805_v0 = vpack.c.bf16 %v1022_v63, %v1021_v61  ;;  %v1809_v3 = vpack.c.bf16 %v1024_v2, %v1023_v1  ;;  %v1025_v4 = vld [vmem:[%s2417_s5 + $0x30] sm:$0xff] }
  0x16   : > { %s1381_s22 = sshll.u32 %s2427_s17, 3  ;;  %1802 = vmatprep.subr.bf16.mxu0 %v1801_v62  ;;  %v1029_v10 = vld [vmem:[%s2417_s5 + $0x50] sm:$0xff] }
  0x17   : > { %s2047_s8 = scalar_lea.vmem %s2412_s0, %s1381_s22  ;;  %s1379_s22 = sshll.u32 %s270_s21, 8 }
  0x18   : > { %v280_v6 = vld [vmem:[%s2047_s8] sm:$0xff]  ;;  %v281_v7 = vld [vmem:[%s2047_s8 + $0x8] sm:$0xff]  ;;  %v282_v8 = vld [vmem:[%s2047_s8 + $0x10] sm:$0xff]  ;;  %s2296_s9 = scalar_lea.vmem [#allocation3], %s1379_s22 }
  0x19   : > { %1557 = vmatprep.mubr.msk.f32.mxu0 %vm321_vm0, %v280_v6  ;;  %v283_v11 = vld [vmem:[%s2047_s8 + $0x18] sm:$0xff]  ;;  %v284_v12 = vld [vmem:[%s2047_s8 + $0x20] sm:$0xff]  ;;  %v297_v14 = vld [vmem:[%s2047_s8 + $0x88] sm:$0xff]  ;;  %s1313_s14 = sshll.u32 %s2296_s9, 4  ;;  %s2364_s14 = int_to_ptr.vmem [resolvable:$true] %s1313_s14 }
  0x1a   : > { %1558 = vmatmul.mubr.msk.f32.vlgmr.msra.gmra.mrb[0].mxu0 %vm321_vm0, %v281_v7  ;;  %v296_v13 = vld [vmem:[%s2047_s8 + $0x80] sm:$0xff]  ;;  %v298_v16 = vld [vmem:[%s2047_s8 + $0x90] sm:$0xff]  ;;  %v285_v19 = vld [vmem:[%s2047_s8 + $0x28] sm:$0xff]  ;;  %s1876_s17 = scalar_lea.vmem %s2364_s14, 4096  ;;  %p1883_p0 = scmp.lt.s32.totalorder %s2364_s14, %s1881_s19 }
  0x1b   : > { %1560 = vmatprep.mubr.msk.f32.mxu0 %vm321_vm0, %v282_v8  ;;  %1581 = vmatprep.mubr.msk.f32.mxu1 %vm321_vm0, %v296_v13  ;;  %v286_v20 = vld [vmem:[%s2047_s8 + $0x30] sm:$0xff]  ;;  %v299_v21 = vld [vmem:[%s2047_s8 + $0x98] sm:$0xff]  ;;  %v300_v22 = vld [vmem:[%s2047_s8 + $0xa0] sm:$0xff]  ;;  %p1877_p11 = scmp.ne.s32.totalorder %s2364_s14, %s1876_s17  ;;  %p1884_p1 = scmp.lt.s32.totalorder %s1882_s20, %s1876_s17 }
  0x1c   : > { %1582 = vmatmul.mubr.msk.f32.vlgmr.msra.gmra.mrb[0].mxu1 %vm321_vm0, %v297_v14  ;;  %v287_v26 = vld [vmem:[%s2047_s8 + $0x38] sm:$0xff]  ;;  %v288_v27 = vld [vmem:[%s2047_s8 + $0x40] sm:$0xff]  ;;  %v301_v28 = vld [vmem:[%s2047_s8 + $0xa8] sm:$0xff]  ;;  %1804 = vmatpush3.bf16.msra.mxu0 %v1801_v62 }
  0x1d   : > { %1584 = vmatprep.mubr.msk.f32.mxu1 %vm321_vm0, %v298_v16  ;;  %1772 = vmatpush3.bf16.msra.mxu1 %v1769_v5  ;;  %v302_v29 = vld [vmem:[%s2047_s8 + $0xb0] sm:$0xff]  ;;  %v289_v33 = vld [vmem:[%s2047_s8 + $0x48] sm:$0xff]  ;;  %v303_v35 = vld [vmem:[%s2047_s8 + $0xb8] sm:$0xff]  ;;  %p1878_p12 = pnand %p1877_p11, %p2021_p5  ;;  %p1885_p2 = por %p1884_p1, %p1883_p0 }
  0x1e   : > { %1561 = vmatmul.mubr.msk.f32.gmra.mrb[2].mxu0 %vm321_vm0, %v283_v11  ;;  %1774 = vmatprep.subr.bf16.mxu1 %v1773_v15  ;;  %v290_v34 = vld [vmem:[%s2047_s8 + $0x50] sm:$0xff]  ;;  %v304_v36 = vld [vmem:[%s2047_s8 + $0xc0] sm:$0xff]  ;;  %v291_v40 = vld [vmem:[%s2047_s8 + $0x58] sm:$0xff] }
  0x1f   : > { %1563 = vmatprep.mubr.msk.f32.mxu0 %vm321_vm0, %v284_v12  ;;  %v292_v41 = vld [vmem:[%s2047_s8 + $0x60] sm:$0xff]  ;;  %v305_v42 = vld [vmem:[%s2047_s8 + $0xc8] sm:$0xff]  ;;  %v306_v43 = vld [vmem:[%s2047_s8 + $0xd0] sm:$0xff]  ;;  %1806 = vmatprep.subr.bf16.mxu0 %v1805_v0  ;;  %p1879_p13 = pneg %p1878_p12 }
  0x20   : > { %1585 = vmatmul.mubr.msk.f32.gmra.mrb[2].mxu1 %vm321_vm0, %v299_v21  ;;  %v293_v47 = vld [vmem:[%s2047_s8 + $0x68] sm:$0xff]  ;;  %v294_v48 = vld [vmem:[%s2047_s8 + $0x70] sm:$0xff]  ;;  %v307_v49 = vld [vmem:[%s2047_s8 + $0xd8] sm:$0xff]  ;;  %1808 = vmatpush3.bf16.msra.mxu0 %v1805_v0 }
  0x21   : > { %1587 = vmatprep.mubr.msk.f32.mxu1 %vm321_vm0, %v300_v22  ;;  %1776 = vmatpush3.bf16.msra.mxu1 %v1773_v15  ;;  %v308_v50 = vld [vmem:[%s2047_s8 + $0xe0] sm:$0xff]  ;;  %v295_v52 = vld [vmem:[%s2047_s8 + $0x78] sm:$0xff]  ;;  %v309_v53 = vld [vmem:[%s2047_s8 + $0xe8] sm:$0xff]  ;;  %p1886_p3 = pnand %p1885_p2, %p1879_p13 }
  0x22   : > { %1564 = vmatmul.mubr.msk.f32.gmra.mrb[4].mxu0 %vm321_vm0, %v285_v19  ;;  %1778 = vmatprep.subr.bf16.mxu1 %v1777_v23  ;;  %v310_v54 = vld [vmem:[%s2047_s8 + $0xf0] sm:$0xff]  ;;  %v311_v55 = vld [vmem:[%s2047_s8 + $0xf8] sm:$0xff]  ;;  %v1027_v7 = vld [vmem:[%s2417_s5 + $0x40] sm:$0xff]  ;;  %s2362_s8 = scalar_lea.hbm %s2419_s7, %s1422_s13 }
  0x23   : > { %1566 = vmatprep.mubr.msk.f32.mxu0 %vm321_vm0, %v286_v20  ;;  %v1026_v5 = vld [vmem:[%s2417_s5 + $0x38] sm:$0xff]  ;;  %1810 = vmatprep.subr.bf16.mxu0 %v1809_v3  ;;  %v1028_v8 = vld [vmem:[%s2417_s5 + $0x48] sm:$0xff]  ;;  %v1031_v13 = vld [vmem:[%s2417_s5 + $0x60] sm:$0xff] }
  0x24   : > { %1588 = vmatmul.mubr.msk.f32.gmra.mrb[4].mxu1 %vm321_vm0, %v301_v28  ;;  %v1813_v6 = vpack.c.bf16 %v1026_v5, %v1025_v4  ;;  %1812 = vmatpush3.bf16.msra.mxu0 %v1809_v3  ;;  %v1817_v9 = vpack.c.bf16 %v1028_v8, %v1027_v7  ;;  %v1030_v11 = vld [vmem:[%s2417_s5 + $0x58] sm:$0xff]  ;;  %v1032_v14 = vld [vmem:[%s2417_s5 + $0x68] sm:$0xff]  ;;  %v2200_v16 = vld [vmem:[%s2414_s2] ss:$0 sm:$0xff] }
  0x25   : > { %1590 = vmatprep.mubr.msk.f32.mxu1 %vm321_vm0, %v302_v29  ;;  %1780 = vmatpush3.bf16.msra.mxu1 %v1777_v23  ;;  %v1821_v12 = vpack.c.bf16 %v1030_v11, %v1029_v10  ;;  %v1825_v15 = vpack.c.bf16 %v1032_v14, %v1031_v13 }
  0x26   : > { %1567 = vmatmul.mubr.msk.f32.gmra.mrb[6].mxu0 %vm321_vm0, %v287_v26  ;;  %1782 = vmatprep.subr.bf16.mxu1 %v1781_v30 }
  0x27   : > { %1569 = vmatprep.mubr.msk.f32.mxu0 %vm321_vm0, %v288_v27  ;;  %1814 = vmatprep.subr.bf16.mxu0 %v1813_v6 }
  0x28   : > { %1591 = vmatmul.mubr.msk.f32.gmra.mrb[6].mxu1 %vm321_vm0, %v303_v35  ;;  %1816 = vmatpush3.bf16.msra.mxu0 %v1813_v6 }
  0x29   : > { %1593 = vmatprep.mubr.msk.f32.mxu1 %vm321_vm0, %v304_v36  ;;  %1784 = vmatpush3.bf16.msra.mxu1 %v1781_v30 }
  0x2a   : > { %1570 = vmatmul.mubr.msk.f32.gmra.mrb[8].mxu0 %vm321_vm0, %v289_v33  ;;  %1786 = vmatprep.subr.bf16.mxu1 %v1785_v37 }
  0x2b   : > { %1572 = vmatprep.mubr.msk.f32.mxu0 %vm321_vm0, %v290_v34  ;;  %1818 = vmatprep.subr.bf16.mxu0 %v1817_v9 }
  0x2c   : > { %1594 = vmatmul.mubr.msk.f32.gmra.mrb[8].mxu1 %vm321_vm0, %v305_v42  ;;  %1820 = vmatpush3.bf16.msra.mxu0 %v1817_v9 }
  0x2d   : > { %1596 = vmatprep.mubr.msk.f32.mxu1 %vm321_vm0, %v306_v43  ;;  %1788 = vmatpush3.bf16.msra.mxu1 %v1785_v37 }
  0x2e   : > { %1573 = vmatmul.mubr.msk.f32.gmra.mrb[10].mxu0 %vm321_vm0, %v291_v40  ;;  %1790 = vmatprep.subr.bf16.mxu1 %v1789_v44 }
  0x2f   : > { %1575 = vmatprep.mubr.msk.f32.mxu0 %vm321_vm0, %v292_v41  ;;  %1822 = vmatprep.subr.bf16.mxu0 %v1821_v12 }
  0x30   : > { %1597 = vmatmul.mubr.msk.f32.gmra.mrb[10].mxu1 %vm321_vm0, %v307_v49  ;;  %1824 = vmatpush3.bf16.msra.mxu0 %v1821_v12 }
  0x31   : > { %1599 = vmatprep.mubr.msk.f32.mxu1 %vm321_vm0, %v308_v50  ;;  %1792 = vmatpush3.bf16.msra.mxu1 %v1789_v44 }
  0x32   : > { %1576 = vmatmul.mubr.msk.f32.gmra.mrb[12].mxu0 %vm321_vm0, %v293_v47  ;;  %1794 = vmatprep.subr.bf16.mxu1 %v1793_v51 }
  0x33   : > { %1578 = vmatprep.mubr.msk.f32.mxu0 %vm321_vm0, %v294_v48  ;;  %1826 = vmatprep.subr.bf16.mxu0 %v1825_v15 }
  0x34   : > { %1600 = vmatmul.mubr.msk.f32.gmra.mrb[12].mxu1 %vm321_vm0, %v309_v53  ;;  %1828 = vmatpush3.bf16.msra.mxu0 %v1825_v15 }
  0x35   : > { %1602 = vmatprep.mubr.msk.f32.mxu1 %vm321_vm0, %v310_v54  ;;  %1796 = vmatpush3.bf16.msra.mxu1 %v1793_v51 }
  0x36   : > { %1579 = vmatmul.mubr.msk.f32.gmra.mrb[14].mxu0 %vm321_vm0, %v295_v52  ;;  %1798 = vmatprep.subr.bf16.mxu1 %v1797_v58 }
  0x38   : > { %1603 = vmatmul.mubr.msk.f32.gmra.mrb[14].mxu1 %vm321_vm0, %v311_v55 }
  0x39   : > { %1800 = vmatpush3.bf16.msra.mxu1 %v1797_v58 }
  0xed   : > { %v1559_v17 = vpop.f32.mrb[0].mxu0 }
  0xee   : > { %v490_v18 = vadd.f32 %v1559_v17, %v2200_v16  ;;  %v484_v19 = vpop.f32.mrb[1].mxu0 }
  0xef   : > { %v485_v20 = vadd.f32 %v2200_v16, %v484_v19  ;;  %v2205_v26 = vpop.f32.mrb[0].mxu1 }
  0xf0   : > { %v644_v23 = vmax.f32 %v490_v18, 0.0  ;;  %v564_v28 = vpop.f32.mrb[1].mxu1  ;;  %v570_v19 = vadd.f32 %v2205_v26, %v2200_v16 }
  0xf1   : > { %v643_v21 = vmax.f32 %v485_v20, 0.0  ;;  %v1562_v22 = vpop.f32.mrb[2].mxu0  ;;  %v565_v7 = vadd.f32 %v2200_v16, %v564_v28 }
  0xf2   : > { %v500_v24 = vadd.f32 %v1562_v22, %v2200_v16  ;;  %v494_v25 = vpop.f32.mrb[3].mxu0 }
  0xf3   : > { %v495_v27 = vadd.f32 %v2200_v16, %v494_v25  ;;  %1637 = vmatprep.mubr.f32.mxu1 %v643_v21  ;;  %v2209_v34 = vpop.f32.mrb[2].mxu1  ;;  %v659_v15 = vmax.f32 %v565_v7, 0.0 }
  0xf4   : > { %1638 = vmatmul.mubr.f32.vlgmr.msra.gmra.mrb[16].mxu1 %v644_v23  ;;  %v646_v31 = vmax.f32 %v500_v24, 0.0  ;;  %v574_v36 = vpop.f32.mrb[3].mxu1  ;;  %v660_v24 = vmax.f32 %v570_v19, 0.0  ;;  %v580_v25 = vadd.f32 %v2209_v34, %v2200_v16 }
  0xf5   : > { %v645_v29 = vmax.f32 %v495_v27, 0.0  ;;  %v1565_v30 = vpop.f32.mrb[4].mxu0  ;;  %v575_v17 = vadd.f32 %v2200_v16, %v574_v36 }
  0xf6   : > { %v510_v32 = vadd.f32 %v1565_v30, %v2200_v16  ;;  %v504_v33 = vpop.f32.mrb[5].mxu0 }
  0xf7   : > { %v505_v35 = vadd.f32 %v2200_v16, %v504_v33  ;;  %1640 = vmatprep.mubr.f32.mxu1 %v645_v29  ;;  %v2213_v42 = vpop.f32.mrb[4].mxu1  ;;  %v661_v22 = vmax.f32 %v575_v17, 0.0  ;;  %v662_v29 = vmax.f32 %v580_v25, 0.0 }
  0xf8   : > { %1641 = vmatmul.mubr.f32.gmra.mrb[18].mxu1 %v646_v31  ;;  %v648_v39 = vmax.f32 %v510_v32, 0.0  ;;  %v584_v44 = vpop.f32.mrb[5].mxu1  ;;  %v590_v26 = vadd.f32 %v2213_v42, %v2200_v16 }
  0xf9   : > { %v647_v37 = vmax.f32 %v505_v35, 0.0  ;;  %v1568_v38 = vpop.f32.mrb[6].mxu0  ;;  %v585_v23 = vadd.f32 %v2200_v16, %v584_v44 }
  0xfa   : > { %v520_v40 = vadd.f32 %v1568_v38, %v2200_v16  ;;  %v514_v41 = vpop.f32.mrb[7].mxu0  ;;  %v664_v32 = vmax.f32 %v590_v26, 0.0 }
  0xfb   : > { %v515_v43 = vadd.f32 %v2200_v16, %v514_v41  ;;  %1643 = vmatprep.mubr.f32.mxu1 %v647_v37  ;;  %v1592_v50 = vpop.f32.mrb[6].mxu1  ;;  %v663_v27 = vmax.f32 %v585_v23, 0.0 }
  0xfc   : > { %1644 = vmatmul.mubr.f32.gmra.mrb[20].mxu1 %v648_v39  ;;  %v650_v47 = vmax.f32 %v520_v40, 0.0  ;;  %v594_v52 = vpop.f32.mrb[7].mxu1  ;;  %v600_v33 = vadd.f32 %v1592_v50, %v2200_v16  ;;  %v1033_v50 = vld [vmem:[%s2417_s5 + $0x70] sm:$0xff] }
  0xfd   : > { %v649_v45 = vmax.f32 %v515_v43, 0.0  ;;  %v1571_v46 = vpop.f32.mrb[8].mxu0  ;;  %v595_v28 = vadd.f32 %v2200_v16, %v594_v52 }
  0xfe   : > { %v530_v48 = vadd.f32 %v1571_v46, %v2200_v16  ;;  %v524_v49 = vpop.f32.mrb[9].mxu0  ;;  %v666_v36 = vmax.f32 %v600_v33, 0.0 }
  0xff   : > { %v525_v51 = vadd.f32 %v2200_v16, %v524_v49  ;;  %1646 = vmatprep.mubr.f32.mxu1 %v649_v45  ;;  %v1595_v58 = vpop.f32.mrb[8].mxu1  ;;  %v665_v30 = vmax.f32 %v595_v28, 0.0 }
 0x100   : > { %1647 = vmatmul.mubr.f32.gmra.mrb[22].mxu1 %v650_v47  ;;  %v652_v55 = vmax.f32 %v530_v48, 0.0  ;;  %v604_v60 = vpop.f32.mrb[9].mxu1  ;;  %v610_v37 = vadd.f32 %v1595_v58, %v2200_v16 }
 0x101   : > { %v651_v53 = vmax.f32 %v525_v51, 0.0  ;;  %v1574_v54 = vpop.f32.mrb[10].mxu0  ;;  %v605_v31 = vadd.f32 %v2200_v16, %v604_v60  ;;  %v1034_v51 = vld [vmem:[%s2417_s5 + $0x78] sm:$0xff] }
 0x102   : > { %v540_v56 = vadd.f32 %v1574_v54, %v2200_v16  ;;  %v534_v57 = vpop.f32.mrb[11].mxu0  ;;  %v668_v40 = vmax.f32 %v610_v37, 0.0  ;;  %v1829_v52 = vpack.c.bf16 %v1034_v51, %v1033_v50 }
 0x103   : > { %v535_v59 = vadd.f32 %v2200_v16, %v534_v57  ;;  %1649 = vmatprep.mubr.f32.mxu1 %v651_v53  ;;  %v1598_v2 = vpop.f32.mrb[10].mxu1  ;;  %v667_v35 = vmax.f32 %v605_v31, 0.0  ;;  %v2252_v53 = vld [vmem:[%s2416_s4] ss:$0 sm:$0xff] }
 0x104   : > { %1650 = vmatmul.mubr.f32.gmra.mrb[24].mxu1 %v652_v55  ;;  %v654_v63 = vmax.f32 %v540_v56, 0.0  ;;  %v614_v4 = vpop.f32.mrb[11].mxu1  ;;  %v620_v41 = vadd.f32 %v1598_v2, %v2200_v16  ;;  %1830 = vmatprep.subr.bf16.mxu0 %v1829_v52 }
 0x105   : > { %v653_v61 = vmax.f32 %v535_v59, 0.0  ;;  %v1577_v62 = vpop.f32.mrb[12].mxu0  ;;  %v615_v34 = vadd.f32 %v2200_v16, %v614_v4  ;;  %1832 = vmatpush3.bf16.msra.mxu0 %v1829_v52 }
 0x106   : > { %v550_v0 = vadd.f32 %v1577_v62, %v2200_v16  ;;  %v544_v1 = vpop.f32.mrb[13].mxu0  ;;  %v670_v44 = vmax.f32 %v620_v41, 0.0 }
 0x107   : > { %v545_v3 = vadd.f32 %v2200_v16, %v544_v1  ;;  %1652 = vmatprep.mubr.f32.mxu1 %v653_v61  ;;  %v1601_v11 = vpop.f32.mrb[12].mxu1  ;;  %v669_v38 = vmax.f32 %v615_v34, 0.0 }
 0x108   : > { %1653 = vmatmul.mubr.f32.gmra.mrb[26].mxu1 %v654_v63  ;;  %v656_v8 = vmax.f32 %v550_v0, 0.0  ;;  %v624_v13 = vpop.f32.mrb[13].mxu1  ;;  %v630_v45 = vadd.f32 %v1601_v11, %v2200_v16 }
 0x109   : > { %v655_v5 = vmax.f32 %v545_v3, 0.0  ;;  %v1580_v6 = vpop.f32.mrb[14].mxu0  ;;  %v625_v39 = vadd.f32 %v2200_v16, %v624_v13 }
 0x10a   : > { %v560_v9 = vadd.f32 %v1580_v6, %v2200_v16  ;;  %v554_v10 = vpop.f32.mrb[15].mxu0  ;;  %v672_v47 = vmax.f32 %v630_v45, 0.0 }
 0x10b   : > { %v555_v12 = vadd.f32 %v2200_v16, %v554_v10  ;;  %1655 = vmatprep.mubr.f32.mxu1 %v655_v5  ;;  %v1604_v20 = vpop.f32.mrb[14].mxu1  ;;  %v671_v42 = vmax.f32 %v625_v39, 0.0 }
 0x10c   : > { %1656 = vmatmul.mubr.f32.gmra.mrb[28].mxu1 %v656_v8  ;;  %v658_v18 = vmax.f32 %v560_v9, 0.0  ;;  %v634_v21 = vpop.f32.mrb[15].mxu1  ;;  %v640_v48 = vadd.f32 %v1604_v20, %v2200_v16 }
 0x10d   : > { %v657_v14 = vmax.f32 %v555_v12, 0.0  ;;  %v635_v43 = vadd.f32 %v2200_v16, %v634_v21 }
 0x10e   : > { %v674_v49 = vmax.f32 %v640_v48, 0.0 }
 0x10f   : > { %1658 = vmatprep.mubr.f32.mxu1 %v657_v14  ;;  %v673_v46 = vmax.f32 %v635_v43, 0.0 }
 0x110   : > { %1659 = vmatmul.mubr.f32.gmra.mrb[30].mxu1 %v658_v18 }
 0x111   : > { %1661 = vmatprep.mubr.f32.mxu1 %v659_v15 }
 0x114   : > { %1662 = vmatmul.mubr.f32.gmra.mrb[32].mxu1 %v660_v24 }
 0x115   : > { %1664 = vmatprep.mubr.f32.mxu1 %v661_v22 }
 0x118   : > { %1665 = vmatmul.mubr.f32.gmra.mrb[34].mxu1 %v662_v29 }
 0x119   : > { %1667 = vmatprep.mubr.f32.mxu1 %v663_v27 }
 0x11c   : > { %1668 = vmatmul.mubr.f32.gmra.mrb[36].mxu1 %v664_v32 }
 0x11d   : > { %1670 = vmatprep.mubr.f32.mxu1 %v665_v30 }
 0x120   : > { %1671 = vmatmul.mubr.f32.gmra.mrb[38].mxu1 %v666_v36 }
 0x121   : > { %1673 = vmatprep.mubr.f32.mxu1 %v667_v35 }
 0x124   : > { %1674 = vmatmul.mubr.f32.gmra.mrb[40].mxu1 %v668_v40 }
 0x125   : > { %1676 = vmatprep.mubr.f32.mxu1 %v669_v38 }
 0x128   : > { %1677 = vmatmul.mubr.f32.gmra.mrb[42].mxu1 %v670_v44 }
 0x129   : > { %1679 = vmatprep.mubr.f32.mxu1 %v671_v42 }
 0x12c   : > { %1680 = vmatmul.mubr.f32.gmra.mrb[44].mxu1 %v672_v47 }
 0x12d   : > { %1682 = vmatprep.mubr.f32.mxu1 %v673_v46 }
 0x130   : > { %1683 = vmatmul.mubr.f32.gmra.mrb[46].mxu1 %v674_v49 }
 0x1c7   : > { %v1639_v16 = vpop.f32.mrb[16].mxu1 }
 0x1c8   : > { %v834_v54 = vadd.f32 %v1639_v16, %v2252_v53  ;;  %v828_v55 = vpop.f32.mrb[17].mxu1 }
 0x1c9   : > { %v829_v56 = vadd.f32 %v2252_v53, %v828_v55 }
 0x1ca   : > { %v988_v59 = vmax.f32 %v834_v54, 0.0 }
 0x1cb   : > { %v987_v57 = vmax.f32 %v829_v56, 0.0  ;;  %v1642_v58 = vpop.f32.mrb[18].mxu1 }
 0x1cc   : > { %v844_v60 = vadd.f32 %v1642_v58, %v2252_v53  ;;  %v838_v61 = vpop.f32.mrb[19].mxu1 }
 0x1cd   : > { %v839_v62 = vadd.f32 %v2252_v53, %v838_v61  ;;  %1717 = vmatprep.mubr.f32.mxu0 %v987_v57 }
 0x1ce   : > { %1718 = vmatmul.mubr.f32.vlgmr.msra.gmra.mrb[16].mxu0 %v988_v59  ;;  %v990_v1 = vmax.f32 %v844_v60, 0.0 }
 0x1cf   : > { %v989_v63 = vmax.f32 %v839_v62, 0.0  ;;  %v1645_v0 = vpop.f32.mrb[20].mxu1 }
 0x1d0   : > { %v854_v2 = vadd.f32 %v1645_v0, %v2252_v53  ;;  %v848_v3 = vpop.f32.mrb[21].mxu1 }
 0x1d1   : > { %v849_v4 = vadd.f32 %v2252_v53, %v848_v3  ;;  %1720 = vmatprep.mubr.f32.mxu0 %v989_v63 }
 0x1d2   : > { %1721 = vmatmul.mubr.f32.gmra.mrb[18].mxu0 %v990_v1  ;;  %v992_v7 = vmax.f32 %v854_v2, 0.0 }
 0x1d3   : > { %v991_v5 = vmax.f32 %v849_v4, 0.0  ;;  %v1648_v6 = vpop.f32.mrb[22].mxu1 }
 0x1d4   : > { %v864_v8 = vadd.f32 %v1648_v6, %v2252_v53  ;;  %v858_v9 = vpop.f32.mrb[23].mxu1 }
 0x1d5   : > { %v859_v10 = vadd.f32 %v2252_v53, %v858_v9  ;;  %1723 = vmatprep.mubr.f32.mxu0 %v991_v5 }
 0x1d6   : > { %1724 = vmatmul.mubr.f32.gmra.mrb[20].mxu0 %v992_v7  ;;  %v994_v13 = vmax.f32 %v864_v8, 0.0 }
 0x1d7   : > { %v993_v11 = vmax.f32 %v859_v10, 0.0  ;;  %v1651_v12 = vpop.f32.mrb[24].mxu1 }
 0x1d8   : > { %v874_v14 = vadd.f32 %v1651_v12, %v2252_v53  ;;  %v868_v15 = vpop.f32.mrb[25].mxu1 }
 0x1d9   : > { %v869_v17 = vadd.f32 %v2252_v53, %v868_v15  ;;  %1726 = vmatprep.mubr.f32.mxu0 %v993_v11 }
 0x1da   : > { %1727 = vmatmul.mubr.f32.gmra.mrb[22].mxu0 %v994_v13  ;;  %v996_v20 = vmax.f32 %v874_v14, 0.0 }
 0x1db   : > { %v995_v18 = vmax.f32 %v869_v17, 0.0  ;;  %v1654_v19 = vpop.f32.mrb[26].mxu1 }
 0x1dc   : > { %v884_v21 = vadd.f32 %v1654_v19, %v2252_v53  ;;  %v878_v22 = vpop.f32.mrb[27].mxu1 }
 0x1dd   : > { %v879_v23 = vadd.f32 %v2252_v53, %v878_v22  ;;  %1729 = vmatprep.mubr.f32.mxu0 %v995_v18 }
 0x1de   : > { %1730 = vmatmul.mubr.f32.gmra.mrb[24].mxu0 %v996_v20  ;;  %v998_v27 = vmax.f32 %v884_v21, 0.0 }
 0x1df   : > { %v997_v24 = vmax.f32 %v879_v23, 0.0  ;;  %v1657_v25 = vpop.f32.mrb[28].mxu1  ;;  %v2292_v23 = vld [vmem:[%s2418_s6] ss:$0 sm:$0xff] }
 0x1e0   : > { %v894_v28 = vadd.f32 %v1657_v25, %v2252_v53  ;;  %v888_v29 = vpop.f32.mrb[29].mxu1 }
 0x1e1   : > { %v889_v26 = vadd.f32 %v2252_v53, %v888_v29  ;;  %1732 = vmatprep.mubr.f32.mxu0 %v997_v24 }
 0x1e2   : > { %1733 = vmatmul.mubr.f32.gmra.mrb[26].mxu0 %v998_v27  ;;  %v1000_v32 = vmax.f32 %v894_v28, 0.0 }
 0x1e3   : > { %v999_v30 = vmax.f32 %v889_v26, 0.0  ;;  %v1660_v31 = vpop.f32.mrb[30].mxu1 }
 0x1e4   : > { %v904_v33 = vadd.f32 %v1660_v31, %v2252_v53  ;;  %v898_v35 = vpop.f32.mrb[31].mxu1 }
 0x1e5   : > { %v899_v34 = vadd.f32 %v2252_v53, %v898_v35  ;;  %1735 = vmatprep.mubr.f32.mxu0 %v999_v30 }
 0x1e6   : > { %1736 = vmatmul.mubr.f32.gmra.mrb[28].mxu0 %v1000_v32  ;;  %v1002_v38 = vmax.f32 %v904_v33, 0.0 }
 0x1e7   : > { %v1001_v36 = vmax.f32 %v899_v34, 0.0  ;;  %v1663_v37 = vpop.f32.mrb[32].mxu1 }
 0x1e8   : > { %v914_v39 = vadd.f32 %v1663_v37, %v2252_v53  ;;  %v908_v40 = vpop.f32.mrb[33].mxu1 }
 0x1e9   : > { %v909_v41 = vadd.f32 %v2252_v53, %v908_v40  ;;  %1738 = vmatprep.mubr.f32.mxu0 %v1001_v36 }
 0x1ea   : > { %1739 = vmatmul.mubr.f32.gmra.mrb[30].mxu0 %v1002_v38  ;;  %v1004_v44 = vmax.f32 %v914_v39, 0.0 }
 0x1eb   : > { %v1003_v42 = vmax.f32 %v909_v41, 0.0  ;;  %v1666_v43 = vpop.f32.mrb[34].mxu1 }
 0x1ec   : > { %v924_v45 = vadd.f32 %v1666_v43, %v2252_v53  ;;  %v918_v46 = vpop.f32.mrb[35].mxu1 }
 0x1ed   : > { %v919_v47 = vadd.f32 %v2252_v53, %v918_v46  ;;  %1741 = vmatprep.mubr.f32.mxu0 %v1003_v42 }
 0x1ee   : > { %1742 = vmatmul.mubr.f32.gmra.mrb[32].mxu0 %v1004_v44  ;;  %v1006_v50 = vmax.f32 %v924_v45, 0.0 }
 0x1ef   : > { %v1005_v48 = vmax.f32 %v919_v47, 0.0  ;;  %v1669_v49 = vpop.f32.mrb[36].mxu1 }
 0x1f0   : > { %v934_v51 = vadd.f32 %v1669_v49, %v2252_v53  ;;  %v928_v52 = vpop.f32.mrb[37].mxu1 }
 0x1f1   : > { %v929_v16 = vadd.f32 %v2252_v53, %v928_v52  ;;  %1744 = vmatprep.mubr.f32.mxu0 %v1005_v48 }
 0x1f2   : > { %1745 = vmatmul.mubr.f32.gmra.mrb[34].mxu0 %v1006_v50  ;;  %v1008_v56 = vmax.f32 %v934_v51, 0.0 }
 0x1f3   : > { %v1007_v54 = vmax.f32 %v929_v16, 0.0  ;;  %v1672_v55 = vpop.f32.mrb[38].mxu1 }
 0x1f4   : > { %v944_v57 = vadd.f32 %v1672_v55, %v2252_v53  ;;  %v938_v58 = vpop.f32.mrb[39].mxu1 }
 0x1f5   : > { %v939_v59 = vadd.f32 %v2252_v53, %v938_v58  ;;  %1747 = vmatprep.mubr.f32.mxu0 %v1007_v54 }
 0x1f6   : > { %1748 = vmatmul.mubr.f32.gmra.mrb[36].mxu0 %v1008_v56  ;;  %v1010_v62 = vmax.f32 %v944_v57, 0.0 }
 0x1f7   : > { %v1009_v60 = vmax.f32 %v939_v59, 0.0  ;;  %v1675_v61 = vpop.f32.mrb[40].mxu1 }
 0x1f8   : > { %v954_v63 = vadd.f32 %v1675_v61, %v2252_v53  ;;  %v948_v0 = vpop.f32.mrb[41].mxu1 }
 0x1f9   : > { %v949_v1 = vadd.f32 %v2252_v53, %v948_v0  ;;  %1750 = vmatprep.mubr.f32.mxu0 %v1009_v60 }
 0x1fa   : > { %1751 = vmatmul.mubr.f32.gmra.mrb[38].mxu0 %v1010_v62  ;;  %v1012_v4 = vmax.f32 %v954_v63, 0.0 }
 0x1fb   : > { %v1011_v2 = vmax.f32 %v949_v1, 0.0  ;;  %v1678_v3 = vpop.f32.mrb[42].mxu1 }
 0x1fc   : > { %v964_v5 = vadd.f32 %v1678_v3, %v2252_v53  ;;  %v958_v6 = vpop.f32.mrb[43].mxu1 }
 0x1fd   : > { %v959_v7 = vadd.f32 %v2252_v53, %v958_v6  ;;  %1753 = vmatprep.mubr.f32.mxu0 %v1011_v2 }
 0x1fe   : > { %1754 = vmatmul.mubr.f32.gmra.mrb[40].mxu0 %v1012_v4  ;;  %v1014_v10 = vmax.f32 %v964_v5, 0.0 }
 0x1ff   : > { %v1013_v8 = vmax.f32 %v959_v7, 0.0  ;;  %v1681_v9 = vpop.f32.mrb[44].mxu1 }
 0x200   : > { %v974_v11 = vadd.f32 %v1681_v9, %v2252_v53  ;;  %v968_v12 = vpop.f32.mrb[45].mxu1 }
 0x201   : > { %v969_v13 = vadd.f32 %v2252_v53, %v968_v12  ;;  %1756 = vmatprep.mubr.f32.mxu0 %v1013_v8 }
 0x202   : > { %1757 = vmatmul.mubr.f32.gmra.mrb[42].mxu0 %v1014_v10  ;;  %v1016_v17 = vmax.f32 %v974_v11, 0.0 }
 0x203   : > { %v1015_v14 = vmax.f32 %v969_v13, 0.0  ;;  %v1684_v15 = vpop.f32.mrb[46].mxu1 }
 0x204   : > { %v984_v18 = vadd.f32 %v1684_v15, %v2252_v53  ;;  %v978_v19 = vpop.f32.mrb[47].mxu1 }
 0x205   : > { %v979_v20 = vadd.f32 %v2252_v53, %v978_v19  ;;  %1759 = vmatprep.mubr.f32.mxu0 %v1015_v14 }
 0x206   : > { %1760 = vmatmul.mubr.f32.gmra.mrb[44].mxu0 %v1016_v17  ;;  %v1018_v22 = vmax.f32 %v984_v18, 0.0 }
 0x207   : > { %v1017_v21 = vmax.f32 %v979_v20, 0.0 }
 0x209   : > { %1762 = vmatprep.mubr.f32.mxu0 %v1017_v21 }
 0x20a   : > { %1763 = vmatmul.mubr.f32.gmra.mrb[46].mxu0 %v1018_v22 }
 0x2a1   : > { %v1719_v24 = vpop.f32.mrb[16].mxu0 }
 0x2a2   : > { %v1114_v25 = vadd.f32 %v1719_v24, %v2292_v23  ;;  %v1108_v27 = vpop.f32.mrb[17].mxu0 }
 0x2a3   : > { %v1109_v53 = vadd.f32 %v2292_v23, %v1108_v27 }
 0x2a4   : > { %1268 = vst [vmem:[%s2296_s9 + $0x8] sm:$0xff] %v1114_v25 }
 0x2a5   : > { %1267 = vst [vmem:[%s2296_s9] sm:$0xff] %v1109_v53  ;;  %v1722_v28 = vpop.f32.mrb[18].mxu0 }
 0x2a6   : > { %v1124_v29 = vadd.f32 %v1722_v28, %v2292_v23  ;;  %v1118_v26 = vpop.f32.mrb[19].mxu0 }
 0x2a7   : > { %v1119_v30 = vadd.f32 %v2292_v23, %v1118_v26 }
 0x2a8   : > { %1270 = vst [vmem:[%s2296_s9 + $0x18] sm:$0xff] %v1124_v29 }
 0x2a9   : > { %1269 = vst [vmem:[%s2296_s9 + $0x10] sm:$0xff] %v1119_v30  ;;  %v1725_v31 = vpop.f32.mrb[20].mxu0 }
 0x2aa   : > { %v1134_v32 = vadd.f32 %v1725_v31, %v2292_v23  ;;  %v1128_v33 = vpop.f32.mrb[21].mxu0 }
 0x2ab   : > { %v1129_v35 = vadd.f32 %v2292_v23, %v1128_v33 }
 0x2ac   : > { %1272 = vst [vmem:[%s2296_s9 + $0x28] sm:$0xff] %v1134_v32 }
 0x2ad   : > { %1271 = vst [vmem:[%s2296_s9 + $0x20] sm:$0xff] %v1129_v35  ;;  %v1728_v34 = vpop.f32.mrb[22].mxu0 }
 0x2ae   : > { %v1144_v36 = vadd.f32 %v1728_v34, %v2292_v23  ;;  %v1138_v37 = vpop.f32.mrb[23].mxu0 }
 0x2af   : > { %v1139_v38 = vadd.f32 %v2292_v23, %v1138_v37 }
 0x2b0   : > { %1274 = vst [vmem:[%s2296_s9 + $0x38] sm:$0xff] %v1144_v36 }
 0x2b1   : > { %1273 = vst [vmem:[%s2296_s9 + $0x30] sm:$0xff] %v1139_v38  ;;  %v1731_v39 = vpop.f32.mrb[24].mxu0 }
 0x2b2   : > { %v1154_v40 = vadd.f32 %v1731_v39, %v2292_v23  ;;  %v1148_v41 = vpop.f32.mrb[25].mxu0 }
 0x2b3   : > { %v1149_v42 = vadd.f32 %v2292_v23, %v1148_v41 }
 0x2b4   : > { %1276 = vst [vmem:[%s2296_s9 + $0x48] sm:$0xff] %v1154_v40 }
 0x2b5   : > { %1275 = vst [vmem:[%s2296_s9 + $0x40] sm:$0xff] %v1149_v42  ;;  %v1734_v43 = vpop.f32.mrb[26].mxu0 }
 0x2b6   : > { %v1164_v44 = vadd.f32 %v1734_v43, %v2292_v23  ;;  %v1158_v45 = vpop.f32.mrb[27].mxu0 }
 0x2b7   : > { %v1159_v46 = vadd.f32 %v2292_v23, %v1158_v45 }
 0x2b8   : > { %1278 = vst [vmem:[%s2296_s9 + $0x58] sm:$0xff] %v1164_v44 }
 0x2b9   : > { %1277 = vst [vmem:[%s2296_s9 + $0x50] sm:$0xff] %v1159_v46  ;;  %v1737_v47 = vpop.f32.mrb[28].mxu0 }
 0x2ba   : > { %v1174_v48 = vadd.f32 %v1737_v47, %v2292_v23  ;;  %v1168_v49 = vpop.f32.mrb[29].mxu0 }
 0x2bb   : > { %v1169_v50 = vadd.f32 %v2292_v23, %v1168_v49 }
 0x2bc   : > { %1280 = vst [vmem:[%s2296_s9 + $0x68] sm:$0xff] %v1174_v48 }
 0x2bd   : > { %1279 = vst [vmem:[%s2296_s9 + $0x60] sm:$0xff] %v1169_v50  ;;  %v1740_v51 = vpop.f32.mrb[30].mxu0 }
 0x2be   : > { %v1184_v52 = vadd.f32 %v1740_v51, %v2292_v23  ;;  %v1178_v16 = vpop.f32.mrb[31].mxu0 }
 0x2bf   : > { %v1179_v54 = vadd.f32 %v2292_v23, %v1178_v16 }
 0x2c0   : > { %1282 = vst [vmem:[%s2296_s9 + $0x78] sm:$0xff] %v1184_v52 }
 0x2c1   : > { %1281 = vst [vmem:[%s2296_s9 + $0x70] sm:$0xff] %v1179_v54  ;;  %v1743_v55 = vpop.f32.mrb[32].mxu0 }
 0x2c2   : > { %v1194_v56 = vadd.f32 %v1743_v55, %v2292_v23  ;;  %v1188_v57 = vpop.f32.mrb[33].mxu0 }
 0x2c3   : > { %v1189_v58 = vadd.f32 %v2292_v23, %v1188_v57 }
 0x2c4   : > { %1284 = vst [vmem:[%s2296_s9 + $0x88] sm:$0xff] %v1194_v56 }
 0x2c5   : > { %1283 = vst [vmem:[%s2296_s9 + $0x80] sm:$0xff] %v1189_v58  ;;  %v1746_v59 = vpop.f32.mrb[34].mxu0 }
 0x2c6   : > { %v1204_v60 = vadd.f32 %v1746_v59, %v2292_v23  ;;  %v1198_v61 = vpop.f32.mrb[35].mxu0 }
 0x2c7   : > { %v1199_v62 = vadd.f32 %v2292_v23, %v1198_v61 }
 0x2c8   : > { %1286 = vst [vmem:[%s2296_s9 + $0x98] sm:$0xff] %v1204_v60 }
 0x2c9   : > { %1285 = vst [vmem:[%s2296_s9 + $0x90] sm:$0xff] %v1199_v62  ;;  %v1749_v63 = vpop.f32.mrb[36].mxu0 }
 0x2ca   : > { %v1214_v0 = vadd.f32 %v1749_v63, %v2292_v23  ;;  %v1208_v1 = vpop.f32.mrb[37].mxu0 }
 0x2cb   : > { %v1209_v2 = vadd.f32 %v2292_v23, %v1208_v1 }
 0x2cc   : > { %1288 = vst [vmem:[%s2296_s9 + $0xa8] sm:$0xff] %v1214_v0 }
 0x2cd   : > { %1287 = vst [vmem:[%s2296_s9 + $0xa0] sm:$0xff] %v1209_v2  ;;  %v1752_v3 = vpop.f32.mrb[38].mxu0 }
 0x2ce   : > { %v1224_v4 = vadd.f32 %v1752_v3, %v2292_v23  ;;  %v1218_v5 = vpop.f32.mrb[39].mxu0 }
 0x2cf   : > { %v1219_v6 = vadd.f32 %v2292_v23, %v1218_v5 }
 0x2d0   : > { %1290 = vst [vmem:[%s2296_s9 + $0xb8] sm:$0xff] %v1224_v4 }
 0x2d1   : > { %1289 = vst [vmem:[%s2296_s9 + $0xb0] sm:$0xff] %v1219_v6  ;;  %v1755_v7 = vpop.f32.mrb[40].mxu0 }
 0x2d2   : > { %v1234_v8 = vadd.f32 %v1755_v7, %v2292_v23  ;;  %v1228_v9 = vpop.f32.mrb[41].mxu0 }
 0x2d3   : > { %v1229_v10 = vadd.f32 %v2292_v23, %v1228_v9 }
 0x2d4   : > { %1292 = vst [vmem:[%s2296_s9 + $0xc8] sm:$0xff] %v1234_v8 }
 0x2d5   : > { %1291 = vst [vmem:[%s2296_s9 + $0xc0] sm:$0xff] %v1229_v10  ;;  %v1758_v11 = vpop.f32.mrb[42].mxu0 }
 0x2d6   : > { %v1244_v12 = vadd.f32 %v1758_v11, %v2292_v23  ;;  %v1238_v13 = vpop.f32.mrb[43].mxu0 }
 0x2d7   : > { %v1239_v14 = vadd.f32 %v2292_v23, %v1238_v13 }
 0x2d8   : > { %1294 = vst [vmem:[%s2296_s9 + $0xd8] sm:$0xff] %v1244_v12 }
 0x2d9   : > { %1293 = vst [vmem:[%s2296_s9 + $0xd0] sm:$0xff] %v1239_v14  ;;  %v1761_v15 = vpop.f32.mrb[44].mxu0 }
 0x2da   : > { %v1254_v17 = vadd.f32 %v1761_v15, %v2292_v23  ;;  %v1248_v18 = vpop.f32.mrb[45].mxu0 }
 0x2db   : > { %v1249_v19 = vadd.f32 %v2292_v23, %v1248_v18 }
 0x2dc   : > { %1296 = vst [vmem:[%s2296_s9 + $0xe8] sm:$0xff] %v1254_v17 }
 0x2dd   : > { %1295 = vst [vmem:[%s2296_s9 + $0xe0] sm:$0xff] %v1249_v19  ;;  %v1764_v20 = vpop.f32.mrb[46].mxu0 }
 0x2de   : > { %v1264_v21 = vadd.f32 %v1764_v20, %v2292_v23  ;;  %v1258_v22 = vpop.f32.mrb[47].mxu0 }
 0x2df   : > { %v1259_v24 = vadd.f32 %v2292_v23, %v1258_v22 }
 0x2e0   : > { %1298 = vst [vmem:[%s2296_s9 + $0xf8] sm:$0xff] %v1264_v21 }
 0x2e1   : > { %1297 = vst [vmem:[%s2296_s9 + $0xf0] sm:$0xff] %v1259_v24 }
 0x2e2   : > { %1889 = shalt.err (!%p1886_p3)
}
 0x2e3   : > { %s1890_s21 = scalar_lea.hbm %s2362_s8, 4096  ;;  %s1894_s29 = scalar_lea.hbm %s2419_s7, 8192 }
 0x2e4   : > { %p1891_p4 = scmp.ne.s32.totalorder %s2362_s8, %s1890_s21  ;;  %p1895_p9 = scmp.lt.u32.totalorder %s2362_s8, %s2419_s7 }
 0x2e5   : > { %p1896_p10 = scmp.lt.u32.totalorder %s1894_s29, %s1890_s21  ;;  %p1898_p12 = scmp.lt.u32.totalorder %s1890_s21, %s2362_s8 }
 0x2e6   : > { %p1892_p7 = pnand %p1891_p4, %p2021_p5 }
 0x2e7   : > { %p1897_p11 = por %p1896_p10, %p1895_p9 }
 0x2e8   : > { %p1893_p8 = pneg %p1892_p7 }
 0x2e9   : > { %p1899_p13 = por %p1898_p12, %p1897_p11 }
 0x2eb   : > { %p1900_p0 = pnand %p1899_p13, %p1893_p8 }
 0x2ed   : > { %1903 = shalt.err (!%p1900_p0)
}
 0x2ee   : > { %s1941_s15 = smov 128   ;;  %s1942_s16 = smov 8  }
 0x2ef   : > { %1835 = dma.vmem_to_hbm [thread:$0]  (%p2021_p5), %s2364_s14, 4096, %s2362_s8, %s2371_s28, %s1941_s15, %s1941_s15, %s1942_s16  }
 0x2f0 PF: > { %p1841_p1 = scmp.ge.s32.totalorder %s1938_s27, 2  ;;  %s1328_s17 = sand.u32 1, %s1926_s24  }
 0x2f1   : > { %s1329_s18 = scalar_lea.sflag [#allocation4], %s1328_s17 }
 0x2f2   : > { %p1838_p2 = pnand %p1841_p1, %p2025_p6 }
 0x2f4   : > { %1921 = dma.done.wait (!%p1838_p2), %s1329_s18, 4096  }
 0x2f5   : > { %1923 = vsyncadd (!%p1838_p2), %s1329_s18, 4294963200  ;;  %p17_p3 = scmp.ge.s32.totalorder %s2008_s30, 4   ;;  %s2422_s24 = smov %s1930_s25 }
 0x2f6   : > { %s2423_s25 = smov %s1934_s26  ;;  %s2424_s26 = smov %s2019_s10 }
 0x2f7   : > { %s2425_s27 = smov %s2008_s30  ;;  %19 = sbr.rel (!%p17_p3) target bundleno = 3 (0x3), region = 83 }
 0x2fe   :  { %1334 = vsyncpa [#allocation4], 1 }
 0x2ff   :  { %1336 = vsyncpa [#allocation4 + $0x1], 1 }

// kernel: tpu_custom_call.1
= control target key start
LH: loop header
LB: loop body
LE: loop exit
PB: predicated region body
PF: predicated region fallthrough
CT: control target
= control target key end

     0   :  { %12 = vsyncpa [#allocation4], 0  ;;  %s2412_s0 = inlined_call_operand.vmem [shape: f32[512,16], index: 0, kind: input, shape index: {}]   ;;  %s2413_s1 = inlined_call_operand.vmem [shape: f32[16,128], index: 1, kind: input, shape index: {}]   ;;  %s2414_s2 = inlined_call_operand.vmem [shape: f32[1,128], index: 2, kind: input, shape index: {}]   ;;  %s2415_s3 = inlined_call_operand.vmem [shape: f32[128,128], index: 3, kind: input, shape index: {}]   ;;  %s2416_s4 = inlined_call_operand.vmem [shape: f32[1,128], index: 4, kind: input, shape index: {}]   ;;  %s2417_s5 = inlined_call_operand.vmem [shape: f32[128,128], index: 5, kind: input, shape index: {}]   ;;  %s2418_s6 = inlined_call_operand.vmem [shape: f32[1,128], index: 6, kind: input, shape index: {}]   ;;  %s2419_s7 = inlined_call_operand.hbm [shape: f32[512,128], index: 7, kind: output, shape index: {}]  }
   0x1   :  { %14 = vsyncpa [#allocation4 + $0x1], 0  ;;  %s1983_s24 = smov 0   ;;  %s1985_s25 = smov 0  }
   0x2   :  { %s1987_s26 = smov 0   ;;  %s1989_s27 = smov 0  }
   0x3 LB: > { %s2004_s28 = sadd.s32 4294967295, %s1938_s27   ;;  %s1375_s29 = sadd.s32 4294967294, %s1938_s27   ;;  %s1938_s27 = sphi %s1989_s27, %s2425_s27   ;;  %s1934_s26 = sphi %s1987_s26, %s2424_s26   ;;  %s1930_s25 = sphi %s1985_s25, %s2423_s25   ;;  %s1926_s24 = sphi %s1983_s24, %s2422_s24  }
   0x4   : > { %s2008_s30 = sadd.s32 1, %s1938_s27   ;;  %s179_s8 = sadd.s32 1, %s1934_s26 }
   0x5   : > { %s176_s9 = ssub.s32 %s1938_s27, %s2008_s30  ;;  %p189_p0 = scmp.ne.s32.totalorder %s1934_s26, %s1930_s25 }
   0x6   : > { %p177_p1 = scmp.eq.s32.totalorder %s176_s9, 0  ;;  %p190_p2 = scmp.eq.s32.totalorder %s2004_s28, 1 }
   0x7   : > { %p195_p3 = scmp.ne.s32.totalorder %s1930_s25, %s1926_s24  ;;  %p196_p4 = scmp.eq.s32.totalorder %s1375_s29, 1 }
   0x8   : > { %s2019_s10 = scalar_select %p177_p1, %s1934_s26, %s179_s8  }
   0x9   : > { %p2021_p5 = por %p190_p2, %p189_p0  ;;  %p2025_p6 = por %p196_p4, %p195_p3 }
   0xa   : > { %p1378_p7 = scmp.ge.s32.totalorder %s1938_s27, 1  ;;  %p241_p8 = scmp.lt.s32.totalorder %s1938_s27, 3 }
   0xc   : > { %p242_p9 = pnand %p1378_p7, %p241_p8 }
   0xd   : > { %v312_v0 = vld [vmem:[%s2413_s1] sm:$0xff] (!%p242_p9)  ;;  %v313_v1 = vld [vmem:[%s2413_s1 + $0x8] sm:$0xff] (!%p242_p9)  ;;  %s1380_s17 = sshll.u32 (!%p242_p9), %s2004_s28, 5  ;;  %vm321_vm0 = vcmask (!%p242_p9), 130048   ;;  %v741_v9 = vld [vmem:[%s2415_s3 + $0x10] sm:$0xff] (!%p242_p9)  ;;  %s270_s21 = sand.u32 (!%p242_p9), 1, %s1930_s25  }
   0xe   : > { %245 = sbr.rel (%p242_p9) target bundleno = 752 (0x2f0), region = 48  ;;  %v739_v2 = vld [vmem:[%s2415_s3] sm:$0xff] (!%p242_p9)  ;;  %v1765_v3 = vpack.c.bf16 (!%p242_p9), %v313_v1, %v312_v0  ;;  %p274_p10 = scmp.lt.s32.totalorder (!%p242_p9), %s1380_s17, 63  ;;  %v740_v4 = vld [vmem:[%s2415_s3 + $0x8] sm:$0xff] (!%p242_p9)  ;;  %v742_v10 = vld [vmem:[%s2415_s3 + $0x18] sm:$0xff] (!%p242_p9) }
   0xf   : > { %v1769_v5 = vpack.c.bf16 (!%p242_p9), %v740_v4, %v739_v2  ;;  %v1773_v15 = vpack.c.bf16 (!%p242_p9), %v742_v10, %v741_v9  ;;  %v743_v17 = vld [vmem:[%s2415_s3 + $0x20] sm:$0xff] (!%p242_p9)  ;;  %v744_v18 = vld [vmem:[%s2415_s3 + $0x28] sm:$0xff] (!%p242_p9)  ;;  %v745_v24 = vld [vmem:[%s2415_s3 + $0x30] sm:$0xff] (!%p242_p9)  ;;  %s1422_s13 = sshll.u32 (!%p242_p9), %s2004_s28, 12  ;;  %s2371_s28 = scalar_lea.sflag (!%p242_p9), [#allocation4], %s270_s21 }
  0x10   : > { %1766 = vmatprep.subr.bf16.mxu0 (!%p242_p9), %v1765_v3  ;;  %1833 = vmatprep.subr.bf16.mxu1 (!%p242_p9), %v1765_v3  ;;  %v1777_v23 = vpack.c.bf16 (!%p242_p9), %v744_v18, %v743_v17  ;;  %v746_v25 = vld [vmem:[%s2415_s3 + $0x38] sm:$0xff] (!%p242_p9)  ;;  %v747_v31 = vld [vmem:[%s2415_s3 + $0x40] sm:$0xff] (!%p242_p9)  ;;  %v748_v32 = vld [vmem:[%s2415_s3 + $0x48] sm:$0xff] (!%p242_p9)  ;;  %s1940_s18 = smov (!%p242_p9), [#allocation3]  }
  0x11   : > { %1768 = vmatpush3.bf16.msra.mxu0 (!%p242_p9), %v1765_v3  ;;  %1834 = vmatpush3.bf16.msra.mxu1 (!%p242_p9), %v1765_v3  ;;  %v1781_v30 = vpack.c.bf16 (!%p242_p9), %v746_v25, %v745_v24  ;;  %v1785_v37 = vpack.c.bf16 (!%p242_p9), %v748_v32, %v747_v31  ;;  %v749_v38 = vld [vmem:[%s2415_s3 + $0x50] sm:$0xff] (!%p242_p9)  ;;  %v750_v39 = vld [vmem:[%s2415_s3 + $0x58] sm:$0xff] (!%p242_p9)  ;;  %v751_v45 = vld [vmem:[%s2415_s3 + $0x60] sm:$0xff] (!%p242_p9)  ;;  %s1880_s19 = sshll.u32 (!%p242_p9), %s1940_s18, 4  ;;  %s1881_s19 = int_to_ptr.vmem [resolvable:$false] %s1880_s19 }
  0x12   : > { %1770 = vmatprep.subr.bf16.mxu1 (!%p242_p9), %v1769_v5  ;;  %v1789_v44 = vpack.c.bf16 (!%p242_p9), %v750_v39, %v749_v38  ;;  %v752_v46 = vld [vmem:[%s2415_s3 + $0x68] sm:$0xff] (!%p242_p9)  ;;  %v753_v56 = vld [vmem:[%s2415_s3 + $0x70] sm:$0xff] (!%p242_p9)  ;;  %v754_v57 = vld [vmem:[%s2415_s3 + $0x78] sm:$0xff] (!%p242_p9)  ;;  %s1882_s20 = scalar_lea.vmem (!%p242_p9), %s1881_s19, 8192 }
  0x13   : > { %v1793_v51 = vpack.c.bf16 (!%p242_p9), %v752_v46, %v751_v45  ;;  %v1797_v58 = vpack.c.bf16 (!%p242_p9), %v754_v57, %v753_v56  ;;  %v1019_v59 = vld [vmem:[%s2417_s5] sm:$0xff] (!%p242_p9)  ;;  %v1020_v60 = vld [vmem:[%s2417_s5 + $0x8] sm:$0xff] (!%p242_p9)  ;;  %v1021_v61 = vld [vmem:[%s2417_s5 + $0x10] sm:$0xff] (!%p242_p9) }
  0x14   : > { %v1801_v62 = vpack.c.bf16 (!%p242_p9), %v1020_v60, %v1019_v59  ;;  %v1022_v63 = vld [vmem:[%s2417_s5 + $0x18] sm:$0xff] (!%p242_p9)  ;;  %v1023_v1 = vld [vmem:[%s2417_s5 + $0x20] sm:$0xff] (!%p242_p9)  ;;  %v1024_v2 = vld [vmem:[%s2417_s5 + $0x28] sm:$0xff] (!%p242_p9) }
  0x15   : > { %s2427_s17 = smov (!%p274_p10, %s1380_s17), 63  ;;  %v1805_v0 = vpack.c.bf16 %v1022_v63, %v1021_v61  ;;  %v1809_v3 = vpack.c.bf16 %v1024_v2, %v1023_v1  ;;  %v1025_v4 = vld [vmem:[%s2417_s5 + $0x30] sm:$0xff] }
  0x16   : > { %s1381_s22 = sshll.u32 %s2427_s17, 3  ;;  %1802 = vmatprep.subr.bf16.mxu0 %v1801_v62  ;;  %v1029_v10 = vld [vmem:[%s2417_s5 + $0x50] sm:$0xff] }
  0x17   : > { %s2047_s8 = scalar_lea.vmem %s2412_s0, %s1381_s22  ;;  %s1379_s22 = sshll.u32 %s270_s21, 8 }
  0x18   : > { %v280_v6 = vld [vmem:[%s2047_s8] sm:$0xff]  ;;  %v281_v7 = vld [vmem:[%s2047_s8 + $0x8] sm:$0xff]  ;;  %v282_v8 = vld [vmem:[%s2047_s8 + $0x10] sm:$0xff]  ;;  %s2296_s9 = scalar_lea.vmem [#allocation3], %s1379_s22 }
  0x19   : > { %1557 = vmatprep.mubr.msk.f32.mxu0 %vm321_vm0, %v280_v6  ;;  %v283_v11 = vld [vmem:[%s2047_s8 + $0x18] sm:$0xff]  ;;  %v284_v12 = vld [vmem:[%s2047_s8 + $0x20] sm:$0xff]  ;;  %v297_v14 = vld [vmem:[%s2047_s8 + $0x88] sm:$0xff]  ;;  %s1313_s14 = sshll.u32 %s2296_s9, 4  ;;  %s2364_s14 = int_to_ptr.vmem [resolvable:$true] %s1313_s14 }
  0x1a   : > { %1558 = vmatmul.mubr.msk.f32.vlgmr.msra.gmra.mrb[0].mxu0 %vm321_vm0, %v281_v7  ;;  %v296_v13 = vld [vmem:[%s2047_s8 + $0x80] sm:$0xff]  ;;  %v298_v16 = vld [vmem:[%s2047_s8 + $0x90] sm:$0xff]  ;;  %v285_v19 = vld [vmem:[%s2047_s8 + $0x28] sm:$0xff]  ;;  %s1876_s17 = scalar_lea.vmem %s2364_s14, 4096  ;;  %p1883_p0 = scmp.lt.s32.totalorder %s2364_s14, %s1881_s19 }
  0x1b   : > { %1560 = vmatprep.mubr.msk.f32.mxu0 %vm321_vm0, %v282_v8  ;;  %1581 = vmatprep.mubr.msk.f32.mxu1 %vm321_vm0, %v296_v13  ;;  %v286_v20 = vld [vmem:[%s2047_s8 + $0x30] sm:$0xff]  ;;  %v299_v21 = vld [vmem:[%s2047_s8 + $0x98] sm:$0xff]  ;;  %v300_v22 = vld [vmem:[%s2047_s8 + $0xa0] sm:$0xff]  ;;  %p1877_p11 = scmp.ne.s32.totalorder %s2364_s14, %s1876_s17  ;;  %p1884_p1 = scmp.lt.s32.totalorder %s1882_s20, %s1876_s17 }
  0x1c   : > { %1582 = vmatmul.mubr.msk.f32.vlgmr.msra.gmra.mrb[0].mxu1 %vm321_vm0, %v297_v14  ;;  %v287_v26 = vld [vmem:[%s2047_s8 + $0x38] sm:$0xff]  ;;  %v288_v27 = vld [vmem:[%s2047_s8 + $0x40] sm:$0xff]  ;;  %v301_v28 = vld [vmem:[%s2047_s8 + $0xa8] sm:$0xff]  ;;  %1804 = vmatpush3.bf16.msra.mxu0 %v1801_v62 }
  0x1d   : > { %1584 = vmatprep.mubr.msk.f32.mxu1 %vm321_vm0, %v298_v16  ;;  %1772 = vmatpush3.bf16.msra.mxu1 %v1769_v5  ;;  %v302_v29 = vld [vmem:[%s2047_s8 + $0xb0] sm:$0xff]  ;;  %v289_v33 = vld [vmem:[%s2047_s8 + $0x48] sm:$0xff]  ;;  %v303_v35 = vld [vmem:[%s2047_s8 + $0xb8] sm:$0xff]  ;;  %p1878_p12 = pnand %p1877_p11, %p2021_p5  ;;  %p1885_p2 = por %p1884_p1, %p1883_p0 }
  0x1e   : > { %1561 = vmatmul.mubr.msk.f32.gmra.mrb[2].mxu0 %vm321_vm0, %v283_v11  ;;  %1774 = vmatprep.subr.bf16.mxu1 %v1773_v15  ;;  %v290_v34 = vld [vmem:[%s2047_s8 + $0x50] sm:$0xff]  ;;  %v304_v36 = vld [vmem:[%s2047_s8 + $0xc0] sm:$0xff]  ;;  %v291_v40 = vld [vmem:[%s2047_s8 + $0x58] sm:$0xff] }
  0x1f   : > { %1563 = vmatprep.mubr.msk.f32.mxu0 %vm321_vm0, %v284_v12  ;;  %v292_v41 = vld [vmem:[%s2047_s8 + $0x60] sm:$0xff]  ;;  %v305_v42 = vld [vmem:[%s2047_s8 + $0xc8] sm:$0xff]  ;;  %v306_v43 = vld [vmem:[%s2047_s8 + $0xd0] sm:$0xff]  ;;  %1806 = vmatprep.subr.bf16.mxu0 %v1805_v0  ;;  %p1879_p13 = pneg %p1878_p12 }
  0x20   : > { %1585 = vmatmul.mubr.msk.f32.gmra.mrb[2].mxu1 %vm321_vm0, %v299_v21  ;;  %v293_v47 = vld [vmem:[%s2047_s8 + $0x68] sm:$0xff]  ;;  %v294_v48 = vld [vmem:[%s2047_s8 + $0x70] sm:$0xff]  ;;  %v307_v49 = vld [vmem:[%s2047_s8 + $0xd8] sm:$0xff]  ;;  %1808 = vmatpush3.bf16.msra.mxu0 %v1805_v0 }
  0x21   : > { %1587 = vmatprep.mubr.msk.f32.mxu1 %vm321_vm0, %v300_v22  ;;  %1776 = vmatpush3.bf16.msra.mxu1 %v1773_v15  ;;  %v308_v50 = vld [vmem:[%s2047_s8 + $0xe0] sm:$0xff]  ;;  %v295_v52 = vld [vmem:[%s2047_s8 + $0x78] sm:$0xff]  ;;  %v309_v53 = vld [vmem:[%s2047_s8 + $0xe8] sm:$0xff]  ;;  %p1886_p3 = pnand %p1885_p2, %p1879_p13 }
  0x22   : > { %1564 = vmatmul.mubr.msk.f32.gmra.mrb[4].mxu0 %vm321_vm0, %v285_v19  ;;  %1778 = vmatprep.subr.bf16.mxu1 %v1777_v23  ;;  %v310_v54 = vld [vmem:[%s2047_s8 + $0xf0] sm:$0xff]  ;;  %v311_v55 = vld [vmem:[%s2047_s8 + $0xf8] sm:$0xff]  ;;  %v1027_v7 = vld [vmem:[%s2417_s5 + $0x40] sm:$0xff]  ;;  %s2362_s8 = scalar_lea.hbm %s2419_s7, %s1422_s13 }
  0x23   : > { %1566 = vmatprep.mubr.msk.f32.mxu0 %vm321_vm0, %v286_v20  ;;  %v1026_v5 = vld [vmem:[%s2417_s5 + $0x38] sm:$0xff]  ;;  %1810 = vmatprep.subr.bf16.mxu0 %v1809_v3  ;;  %v1028_v8 = vld [vmem:[%s2417_s5 + $0x48] sm:$0xff]  ;;  %v1031_v13 = vld [vmem:[%s2417_s5 + $0x60] sm:$0xff] }
  0x24   : > { %1588 = vmatmul.mubr.msk.f32.gmra.mrb[4].mxu1 %vm321_vm0, %v301_v28  ;;  %v1813_v6 = vpack.c.bf16 %v1026_v5, %v1025_v4  ;;  %1812 = vmatpush3.bf16.msra.mxu0 %v1809_v3  ;;  %v1817_v9 = vpack.c.bf16 %v1028_v8, %v1027_v7  ;;  %v1030_v11 = vld [vmem:[%s2417_s5 + $0x58] sm:$0xff]  ;;  %v1032_v14 = vld [vmem:[%s2417_s5 + $0x68] sm:$0xff]  ;;  %v2200_v16 = vld [vmem:[%s2414_s2] ss:$0 sm:$0xff] }
  0x25   : > { %1590 = vmatprep.mubr.msk.f32.mxu1 %vm321_vm0, %v302_v29  ;;  %1780 = vmatpush3.bf16.msra.mxu1 %v1777_v23  ;;  %v1821_v12 = vpack.c.bf16 %v1030_v11, %v1029_v10  ;;  %v1825_v15 = vpack.c.bf16 %v1032_v14, %v1031_v13 }
  0x26   : > { %1567 = vmatmul.mubr.msk.f32.gmra.mrb[6].mxu0 %vm321_vm0, %v287_v26  ;;  %1782 = vmatprep.subr.bf16.mxu1 %v1781_v30 }
  0x27   : > { %1569 = vmatprep.mubr.msk.f32.mxu0 %vm321_vm0, %v288_v27  ;;  %1814 = vmatprep.subr.bf16.mxu0 %v1813_v6 }
  0x28   : > { %1591 = vmatmul.mubr.msk.f32.gmra.mrb[6].mxu1 %vm321_vm0, %v303_v35  ;;  %1816 = vmatpush3.bf16.msra.mxu0 %v1813_v6 }
  0x29   : > { %1593 = vmatprep.mubr.msk.f32.mxu1 %vm321_vm0, %v304_v36  ;;  %1784 = vmatpush3.bf16.msra.mxu1 %v1781_v30 }
  0x2a   : > { %1570 = vmatmul.mubr.msk.f32.gmra.mrb[8].mxu0 %vm321_vm0, %v289_v33  ;;  %1786 = vmatprep.subr.bf16.mxu1 %v1785_v37 }
  0x2b   : > { %1572 = vmatprep.mubr.msk.f32.mxu0 %vm321_vm0, %v290_v34  ;;  %1818 = vmatprep.subr.bf16.mxu0 %v1817_v9 }
  0x2c   : > { %1594 = vmatmul.mubr.msk.f32.gmra.mrb[8].mxu1 %vm321_vm0, %v305_v42  ;;  %1820 = vmatpush3.bf16.msra.mxu0 %v1817_v9 }
  0x2d   : > { %1596 = vmatprep.mubr.msk.f32.mxu1 %vm321_vm0, %v306_v43  ;;  %1788 = vmatpush3.bf16.msra.mxu1 %v1785_v37 }
  0x2e   : > { %1573 = vmatmul.mubr.msk.f32.gmra.mrb[10].mxu0 %vm321_vm0, %v291_v40  ;;  %1790 = vmatprep.subr.bf16.mxu1 %v1789_v44 }
  0x2f   : > { %1575 = vmatprep.mubr.msk.f32.mxu0 %vm321_vm0, %v292_v41  ;;  %1822 = vmatprep.subr.bf16.mxu0 %v1821_v12 }
  0x30   : > { %1597 = vmatmul.mubr.msk.f32.gmra.mrb[10].mxu1 %vm321_vm0, %v307_v49  ;;  %1824 = vmatpush3.bf16.msra.mxu0 %v1821_v12 }
  0x31   : > { %1599 = vmatprep.mubr.msk.f32.mxu1 %vm321_vm0, %v308_v50  ;;  %1792 = vmatpush3.bf16.msra.mxu1 %v1789_v44 }
  0x32   : > { %1576 = vmatmul.mubr.msk.f32.gmra.mrb[12].mxu0 %vm321_vm0, %v293_v47  ;;  %1794 = vmatprep.subr.bf16.mxu1 %v1793_v51 }
  0x33   : > { %1578 = vmatprep.mubr.msk.f32.mxu0 %vm321_vm0, %v294_v48  ;;  %1826 = vmatprep.subr.bf16.mxu0 %v1825_v15 }
  0x34   : > { %1600 = vmatmul.mubr.msk.f32.gmra.mrb[12].mxu1 %vm321_vm0, %v309_v53  ;;  %1828 = vmatpush3.bf16.msra.mxu0 %v1825_v15 }
  0x35   : > { %1602 = vmatprep.mubr.msk.f32.mxu1 %vm321_vm0, %v310_v54  ;;  %1796 = vmatpush3.bf16.msra.mxu1 %v1793_v51 }
  0x36   : > { %1579 = vmatmul.mubr.msk.f32.gmra.mrb[14].mxu0 %vm321_vm0, %v295_v52  ;;  %1798 = vmatprep.subr.bf16.mxu1 %v1797_v58 }
  0x38   : > { %1603 = vmatmul.mubr.msk.f32.gmra.mrb[14].mxu1 %vm321_vm0, %v311_v55 }
  0x39   : > { %1800 = vmatpush3.bf16.msra.mxu1 %v1797_v58 }
  0xed   : > { %v1559_v17 = vpop.f32.mrb[0].mxu0 }
  0xee   : > { %v490_v18 = vadd.f32 %v1559_v17, %v2200_v16  ;;  %v484_v19 = vpop.f32.mrb[1].mxu0 }
  0xef   : > { %v485_v20 = vadd.f32 %v2200_v16, %v484_v19  ;;  %v2205_v26 = vpop.f32.mrb[0].mxu1 }
  0xf0   : > { %v644_v23 = vmax.f32 %v490_v18, 0.0  ;;  %v564_v28 = vpop.f32.mrb[1].mxu1  ;;  %v570_v19 = vadd.f32 %v2205_v26, %v2200_v16 }
  0xf1   : > { %v643_v21 = vmax.f32 %v485_v20, 0.0  ;;  %v1562_v22 = vpop.f32.mrb[2].mxu0  ;;  %v565_v7 = vadd.f32 %v2200_v16, %v564_v28 }
  0xf2   : > { %v500_v24 = vadd.f32 %v1562_v22, %v2200_v16  ;;  %v494_v25 = vpop.f32.mrb[3].mxu0 }
  0xf3   : > { %v495_v27 = vadd.f32 %v2200_v16, %v494_v25  ;;  %1637 = vmatprep.mubr.f32.mxu1 %v643_v21  ;;  %v2209_v34 = vpop.f32.mrb[2].mxu1  ;;  %v659_v15 = vmax.f32 %v565_v7, 0.0 }
  0xf4   : > { %1638 = vmatmul.mubr.f32.vlgmr.msra.gmra.mrb[16].mxu1 %v644_v23  ;;  %v646_v31 = vmax.f32 %v500_v24, 0.0  ;;  %v574_v36 = vpop.f32.mrb[3].mxu1  ;;  %v660_v24 = vmax.f32 %v570_v19, 0.0  ;;  %v580_v25 = vadd.f32 %v2209_v34, %v2200_v16 }
  0xf5   : > { %v645_v29 = vmax.f32 %v495_v27, 0.0  ;;  %v1565_v30 = vpop.f32.mrb[4].mxu0  ;;  %v575_v17 = vadd.f32 %v2200_v16, %v574_v36 }
  0xf6   : > { %v510_v32 = vadd.f32 %v1565_v30, %v2200_v16  ;;  %v504_v33 = vpop.f32.mrb[5].mxu0 }
  0xf7   : > { %v505_v35 = vadd.f32 %v2200_v16, %v504_v33  ;;  %1640 = vmatprep.mubr.f32.mxu1 %v645_v29  ;;  %v2213_v42 = vpop.f32.mrb[4].mxu1  ;;  %v661_v22 = vmax.f32 %v575_v17, 0.0  ;;  %v662_v29 = vmax.f32 %v580_v25, 0.0 }
  0xf8   : > { %1641 = vmatmul.mubr.f32.gmra.mrb[18].mxu1 %v646_v31  ;;  %v648_v39 = vmax.f32 %v510_v32, 0.0  ;;  %v584_v44 = vpop.f32.mrb[5].mxu1  ;;  %v590_v26 = vadd.f32 %v2213_v42, %v2200_v16 }
  0xf9   : > { %v647_v37 = vmax.f32 %v505_v35, 0.0  ;;  %v1568_v38 = vpop.f32.mrb[6].mxu0  ;;  %v585_v23 = vadd.f32 %v2200_v16, %v584_v44 }
  0xfa   : > { %v520_v40 = vadd.f32 %v1568_v38, %v2200_v16  ;;  %v514_v41 = vpop.f32.mrb[7].mxu0  ;;  %v664_v32 = vmax.f32 %v590_v26, 0.0 }
  0xfb   : > { %v515_v43 = vadd.f32 %v2200_v16, %v514_v41  ;;  %1643 = vmatprep.mubr.f32.mxu1 %v647_v37  ;;  %v1592_v50 = vpop.f32.mrb[6].mxu1  ;;  %v663_v27 = vmax.f32 %v585_v23, 0.0 }
  0xfc   : > { %1644 = vmatmul.mubr.f32.gmra.mrb[20].mxu1 %v648_v39  ;;  %v650_v47 = vmax.f32 %v520_v40, 0.0  ;;  %v594_v52 = vpop.f32.mrb[7].mxu1  ;;  %v600_v33 = vadd.f32 %v1592_v50, %v2200_v16  ;;  %v1033_v50 = vld [vmem:[%s2417_s5 + $0x70] sm:$0xff] }
  0xfd   : > { %v649_v45 = vmax.f32 %v515_v43, 0.0  ;;  %v1571_v46 = vpop.f32.mrb[8].mxu0  ;;  %v595_v28 = vadd.f32 %v2200_v16, %v594_v52 }
  0xfe   : > { %v530_v48 = vadd.f32 %v1571_v46, %v2200_v16  ;;  %v524_v49 = vpop.f32.mrb[9].mxu0  ;;  %v666_v36 = vmax.f32 %v600_v33, 0.0 }
  0xff   : > { %v525_v51 = vadd.f32 %v2200_v16, %v524_v49  ;;  %1646 = vmatprep.mubr.f32.mxu1 %v649_v45  ;;  %v1595_v58 = vpop.f32.mrb[8].mxu1  ;;  %v665_v30 = vmax.f32 %v595_v28, 0.0 }
 0x100   : > { %1647 = vmatmul.mubr.f32.gmra.mrb[22].mxu1 %v650_v47  ;;  %v652_v55 = vmax.f32 %v530_v48, 0.0  ;;  %v604_v60 = vpop.f32.mrb[9].mxu1  ;;  %v610_v37 = vadd.f32 %v1595_v58, %v2200_v16 }
 0x101   : > { %v651_v53 = vmax.f32 %v525_v51, 0.0  ;;  %v1574_v54 = vpop.f32.mrb[10].mxu0  ;;  %v605_v31 = vadd.f32 %v2200_v16, %v604_v60  ;;  %v1034_v51 = vld [vmem:[%s2417_s5 + $0x78] sm:$0xff] }
 0x102   : > { %v540_v56 = vadd.f32 %v1574_v54, %v2200_v16  ;;  %v534_v57 = vpop.f32.mrb[11].mxu0  ;;  %v668_v40 = vmax.f32 %v610_v37, 0.0  ;;  %v1829_v52 = vpack.c.bf16 %v1034_v51, %v1033_v50 }
 0x103   : > { %v535_v59 = vadd.f32 %v2200_v16, %v534_v57  ;;  %1649 = vmatprep.mubr.f32.mxu1 %v651_v53  ;;  %v1598_v2 = vpop.f32.mrb[10].mxu1  ;;  %v667_v35 = vmax.f32 %v605_v31, 0.0  ;;  %v2252_v53 = vld [vmem:[%s2416_s4] ss:$0 sm:$0xff] }
 0x104   : > { %1650 = vmatmul.mubr.f32.gmra.mrb[24].mxu1 %v652_v55  ;;  %v654_v63 = vmax.f32 %v540_v56, 0.0  ;;  %v614_v4 = vpop.f32.mrb[11].mxu1  ;;  %v620_v41 = vadd.f32 %v1598_v2, %v2200_v16  ;;  %1830 = vmatprep.subr.bf16.mxu0 %v1829_v52 }
 0x105   : > { %v653_v61 = vmax.f32 %v535_v59, 0.0  ;;  %v1577_v62 = vpop.f32.mrb[12].mxu0  ;;  %v615_v34 = vadd.f32 %v2200_v16, %v614_v4  ;;  %1832 = vmatpush3.bf16.msra.mxu0 %v1829_v52 }
 0x106   : > { %v550_v0 = vadd.f32 %v1577_v62, %v2200_v16  ;;  %v544_v1 = vpop.f32.mrb[13].mxu0  ;;  %v670_v44 = vmax.f32 %v620_v41, 0.0 }
 0x107   : > { %v545_v3 = vadd.f32 %v2200_v16, %v544_v1  ;;  %1652 = vmatprep.mubr.f32.mxu1 %v653_v61  ;;  %v1601_v11 = vpop.f32.mrb[12].mxu1  ;;  %v669_v38 = vmax.f32 %v615_v34, 0.0 }
 0x108   : > { %1653 = vmatmul.mubr.f32.gmra.mrb[26].mxu1 %v654_v63  ;;  %v656_v8 = vmax.f32 %v550_v0, 0.0  ;;  %v624_v13 = vpop.f32.mrb[13].mxu1  ;;  %v630_v45 = vadd.f32 %v1601_v11, %v2200_v16 }
 0x109   : > { %v655_v5 = vmax.f32 %v545_v3, 0.0  ;;  %v1580_v6 = vpop.f32.mrb[14].mxu0  ;;  %v625_v39 = vadd.f32 %v2200_v16, %v624_v13 }
 0x10a   : > { %v560_v9 = vadd.f32 %v1580_v6, %v2200_v16  ;;  %v554_v10 = vpop.f32.mrb[15].mxu0  ;;  %v672_v47 = vmax.f32 %v630_v45, 0.0 }
 0x10b   : > { %v555_v12 = vadd.f32 %v2200_v16, %v554_v10  ;;  %1655 = vmatprep.mubr.f32.mxu1 %v655_v5  ;;  %v1604_v20 = vpop.f32.mrb[14].mxu1  ;;  %v671_v42 = vmax.f32 %v625_v39, 0.0 }
 0x10c   : > { %1656 = vmatmul.mubr.f32.gmra.mrb[28].mxu1 %v656_v8  ;;  %v658_v18 = vmax.f32 %v560_v9, 0.0  ;;  %v634_v21 = vpop.f32.mrb[15].mxu1  ;;  %v640_v48 = vadd.f32 %v1604_v20, %v2200_v16 }
 0x10d   : > { %v657_v14 = vmax.f32 %v555_v12, 0.0  ;;  %v635_v43 = vadd.f32 %v2200_v16, %v634_v21 }
 0x10e   : > { %v674_v49 = vmax.f32 %v640_v48, 0.0 }
 0x10f   : > { %1658 = vmatprep.mubr.f32.mxu1 %v657_v14  ;;  %v673_v46 = vmax.f32 %v635_v43, 0.0 }
 0x110   : > { %1659 = vmatmul.mubr.f32.gmra.mrb[30].mxu1 %v658_v18 }
 0x111   : > { %1661 = vmatprep.mubr.f32.mxu1 %v659_v15 }
 0x114   : > { %1662 = vmatmul.mubr.f32.gmra.mrb[32].mxu1 %v660_v24 }
 0x115   : > { %1664 = vmatprep.mubr.f32.mxu1 %v661_v22 }
 0x118   : > { %1665 = vmatmul.mubr.f32.gmra.mrb[34].mxu1 %v662_v29 }
 0x119   : > { %1667 = vmatprep.mubr.f32.mxu1 %v663_v27 }
 0x11c   : > { %1668 = vmatmul.mubr.f32.gmra.mrb[36].mxu1 %v664_v32 }
 0x11d   : > { %1670 = vmatprep.mubr.f32.mxu1 %v665_v30 }
 0x120   : > { %1671 = vmatmul.mubr.f32.gmra.mrb[38].mxu1 %v666_v36 }
 0x121   : > { %1673 = vmatprep.mubr.f32.mxu1 %v667_v35 }
 0x124   : > { %1674 = vmatmul.mubr.f32.gmra.mrb[40].mxu1 %v668_v40 }
 0x125   : > { %1676 = vmatprep.mubr.f32.mxu1 %v669_v38 }
 0x128   : > { %1677 = vmatmul.mubr.f32.gmra.mrb[42].mxu1 %v670_v44 }
 0x129   : > { %1679 = vmatprep.mubr.f32.mxu1 %v671_v42 }
 0x12c   : > { %1680 = vmatmul.mubr.f32.gmra.mrb[44].mxu1 %v672_v47 }
 0x12d   : > { %1682 = vmatprep.mubr.f32.mxu1 %v673_v46 }
 0x130   : > { %1683 = vmatmul.mubr.f32.gmra.mrb[46].mxu1 %v674_v49 }
 0x1c7   : > { %v1639_v16 = vpop.f32.mrb[16].mxu1 }
 0x1c8   : > { %v834_v54 = vadd.f32 %v1639_v16, %v2252_v53  ;;  %v828_v55 = vpop.f32.mrb[17].mxu1 }
 0x1c9   : > { %v829_v56 = vadd.f32 %v2252_v53, %v828_v55 }
 0x1ca   : > { %v988_v59 = vmax.f32 %v834_v54, 0.0 }
 0x1cb   : > { %v987_v57 = vmax.f32 %v829_v56, 0.0  ;;  %v1642_v58 = vpop.f32.mrb[18].mxu1 }
 0x1cc   : > { %v844_v60 = vadd.f32 %v1642_v58, %v2252_v53  ;;  %v838_v61 = vpop.f32.mrb[19].mxu1 }
 0x1cd   : > { %v839_v62 = vadd.f32 %v2252_v53, %v838_v61  ;;  %1717 = vmatprep.mubr.f32.mxu0 %v987_v57 }
 0x1ce   : > { %1718 = vmatmul.mubr.f32.vlgmr.msra.gmra.mrb[16].mxu0 %v988_v59  ;;  %v990_v1 = vmax.f32 %v844_v60, 0.0 }
 0x1cf   : > { %v989_v63 = vmax.f32 %v839_v62, 0.0  ;;  %v1645_v0 = vpop.f32.mrb[20].mxu1 }
 0x1d0   : > { %v854_v2 = vadd.f32 %v1645_v0, %v2252_v53  ;;  %v848_v3 = vpop.f32.mrb[21].mxu1 }
 0x1d1   : > { %v849_v4 = vadd.f32 %v2252_v53, %v848_v3  ;;  %1720 = vmatprep.mubr.f32.mxu0 %v989_v63 }
 0x1d2   : > { %1721 = vmatmul.mubr.f32.gmra.mrb[18].mxu0 %v990_v1  ;;  %v992_v7 = vmax.f32 %v854_v2, 0.0 }
 0x1d3   : > { %v991_v5 = vmax.f32 %v849_v4, 0.0  ;;  %v1648_v6 = vpop.f32.mrb[22].mxu1 }
 0x1d4   : > { %v864_v8 = vadd.f32 %v1648_v6, %v2252_v53  ;;  %v858_v9 = vpop.f32.mrb[23].mxu1 }
 0x1d5   : > { %v859_v10 = vadd.f32 %v2252_v53, %v858_v9  ;;  %1723 = vmatprep.mubr.f32.mxu0 %v991_v5 }
 0x1d6   : > { %1724 = vmatmul.mubr.f32.gmra.mrb[20].mxu0 %v992_v7  ;;  %v994_v13 = vmax.f32 %v864_v8, 0.0 }
 0x1d7   : > { %v993_v11 = vmax.f32 %v859_v10, 0.0  ;;  %v1651_v12 = vpop.f32.mrb[24].mxu1 }
 0x1d8   : > { %v874_v14 = vadd.f32 %v1651_v12, %v2252_v53  ;;  %v868_v15 = vpop.f32.mrb[25].mxu1 }
 0x1d9   : > { %v869_v17 = vadd.f32 %v2252_v53, %v868_v15  ;;  %1726 = vmatprep.mubr.f32.mxu0 %v993_v11 }
 0x1da   : > { %1727 = vmatmul.mubr.f32.gmra.mrb[22].mxu0 %v994_v13  ;;  %v996_v20 = vmax.f32 %v874_v14, 0.0 }
 0x1db   : > { %v995_v18 = vmax.f32 %v869_v17, 0.0  ;;  %v1654_v19 = vpop.f32.mrb[26].mxu1 }
 0x1dc   : > { %v884_v21 = vadd.f32 %v1654_v19, %v2252_v53  ;;  %v878_v22 = vpop.f32.mrb[27].mxu1 }
 0x1dd   : > { %v879_v23 = vadd.f32 %v2252_v53, %v878_v22  ;;  %1729 = vmatprep.mubr.f32.mxu0 %v995_v18 }
 0x1de   : > { %1730 = vmatmul.mubr.f32.gmra.mrb[24].mxu0 %v996_v20  ;;  %v998_v27 = vmax.f32 %v884_v21, 0.0 }
 0x1df   : > { %v997_v24 = vmax.f32 %v879_v23, 0.0  ;;  %v1657_v25 = vpop.f32.mrb[28].mxu1  ;;  %v2292_v23 = vld [vmem:[%s2418_s6] ss:$0 sm:$0xff] }
 0x1e0   : > { %v894_v28 = vadd.f32 %v1657_v25, %v2252_v53  ;;  %v888_v29 = vpop.f32.mrb[29].mxu1 }
 0x1e1   : > { %v889_v26 = vadd.f32 %v2252_v53, %v888_v29  ;;  %1732 = vmatprep.mubr.f32.mxu0 %v997_v24 }
 0x1e2   : > { %1733 = vmatmul.mubr.f32.gmra.mrb[26].mxu0 %v998_v27  ;;  %v1000_v32 = vmax.f32 %v894_v28, 0.0 }
 0x1e3   : > { %v999_v30 = vmax.f32 %v889_v26, 0.0  ;;  %v1660_v31 = vpop.f32.mrb[30].mxu1 }
 0x1e4   : > { %v904_v33 = vadd.f32 %v1660_v31, %v2252_v53  ;;  %v898_v35 = vpop.f32.mrb[31].mxu1 }
 0x1e5   : > { %v899_v34 = vadd.f32 %v2252_v53, %v898_v35  ;;  %1735 = vmatprep.mubr.f32.mxu0 %v999_v30 }
 0x1e6   : > { %1736 = vmatmul.mubr.f32.gmra.mrb[28].mxu0 %v1000_v32  ;;  %v1002_v38 = vmax.f32 %v904_v33, 0.0 }
 0x1e7   : > { %v1001_v36 = vmax.f32 %v899_v34, 0.0  ;;  %v1663_v37 = vpop.f32.mrb[32].mxu1 }
 0x1e8   : > { %v914_v39 = vadd.f32 %v1663_v37, %v2252_v53  ;;  %v908_v40 = vpop.f32.mrb[33].mxu1 }
 0x1e9   : > { %v909_v41 = vadd.f32 %v2252_v53, %v908_v40  ;;  %1738 = vmatprep.mubr.f32.mxu0 %v1001_v36 }
 0x1ea   : > { %1739 = vmatmul.mubr.f32.gmra.mrb[30].mxu0 %v1002_v38  ;;  %v1004_v44 = vmax.f32 %v914_v39, 0.0 }
 0x1eb   : > { %v1003_v42 = vmax.f32 %v909_v41, 0.0  ;;  %v1666_v43 = vpop.f32.mrb[34].mxu1 }
 0x1ec   : > { %v924_v45 = vadd.f32 %v1666_v43, %v2252_v53  ;;  %v918_v46 = vpop.f32.mrb[35].mxu1 }
 0x1ed   : > { %v919_v47 = vadd.f32 %v2252_v53, %v918_v46  ;;  %1741 = vmatprep.mubr.f32.mxu0 %v1003_v42 }
 0x1ee   : > { %1742 = vmatmul.mubr.f32.gmra.mrb[32].mxu0 %v1004_v44  ;;  %v1006_v50 = vmax.f32 %v924_v45, 0.0 }
 0x1ef   : > { %v1005_v48 = vmax.f32 %v919_v47, 0.0  ;;  %v1669_v49 = vpop.f32.mrb[36].mxu1 }
 0x1f0   : > { %v934_v51 = vadd.f32 %v1669_v49, %v2252_v53  ;;  %v928_v52 = vpop.f32.mrb[37].mxu1 }
 0x1f1   : > { %v929_v16 = vadd.f32 %v2252_v53, %v928_v52  ;;  %1744 = vmatprep.mubr.f32.mxu0 %v1005_v48 }
 0x1f2   : > { %1745 = vmatmul.mubr.f32.gmra.mrb[34].mxu0 %v1006_v50  ;;  %v1008_v56 = vmax.f32 %v934_v51, 0.0 }
 0x1f3   : > { %v1007_v54 = vmax.f32 %v929_v16, 0.0  ;;  %v1672_v55 = vpop.f32.mrb[38].mxu1 }
 0x1f4   : > { %v944_v57 = vadd.f32 %v1672_v55, %v2252_v53  ;;  %v938_v58 = vpop.f32.mrb[39].mxu1 }
 0x1f5   : > { %v939_v59 = vadd.f32 %v2252_v53, %v938_v58  ;;  %1747 = vmatprep.mubr.f32.mxu0 %v1007_v54 }
 0x1f6   : > { %1748 = vmatmul.mubr.f32.gmra.mrb[36].mxu0 %v1008_v56  ;;  %v1010_v62 = vmax.f32 %v944_v57, 0.0 }
 0x1f7   : > { %v1009_v60 = vmax.f32 %v939_v59, 0.0  ;;  %v1675_v61 = vpop.f32.mrb[40].mxu1 }
 0x1f8   : > { %v954_v63 = vadd.f32 %v1675_v61, %v2252_v53  ;;  %v948_v0 = vpop.f32.mrb[41].mxu1 }
 0x1f9   : > { %v949_v1 = vadd.f32 %v2252_v53, %v948_v0  ;;  %1750 = vmatprep.mubr.f32.mxu0 %v1009_v60 }
 0x1fa   : > { %1751 = vmatmul.mubr.f32.gmra.mrb[38].mxu0 %v1010_v62  ;;  %v1012_v4 = vmax.f32 %v954_v63, 0.0 }
 0x1fb   : > { %v1011_v2 = vmax.f32 %v949_v1, 0.0  ;;  %v1678_v3 = vpop.f32.mrb[42].mxu1 }
 0x1fc   : > { %v964_v5 = vadd.f32 %v1678_v3, %v2252_v53  ;;  %v958_v6 = vpop.f32.mrb[43].mxu1 }
 0x1fd   : > { %v959_v7 = vadd.f32 %v2252_v53, %v958_v6  ;;  %1753 = vmatprep.mubr.f32.mxu0 %v1011_v2 }
 0x1fe   : > { %1754 = vmatmul.mubr.f32.gmra.mrb[40].mxu0 %v1012_v4  ;;  %v1014_v10 = vmax.f32 %v964_v5, 0.0 }
 0x1ff   : > { %v1013_v8 = vmax.f32 %v959_v7, 0.0  ;;  %v1681_v9 = vpop.f32.mrb[44].mxu1 }
 0x200   : > { %v974_v11 = vadd.f32 %v1681_v9, %v2252_v53  ;;  %v968_v12 = vpop.f32.mrb[45].mxu1 }
 0x201   : > { %v969_v13 = vadd.f32 %v2252_v53, %v968_v12  ;;  %1756 = vmatprep.mubr.f32.mxu0 %v1013_v8 }
 0x202   : > { %1757 = vmatmul.mubr.f32.gmra.mrb[42].mxu0 %v1014_v10  ;;  %v1016_v17 = vmax.f32 %v974_v11, 0.0 }
 0x203   : > { %v1015_v14 = vmax.f32 %v969_v13, 0.0  ;;  %v1684_v15 = vpop.f32.mrb[46].mxu1 }
 0x204   : > { %v984_v18 = vadd.f32 %v1684_v15, %v2252_v53  ;;  %v978_v19 = vpop.f32.mrb[47].mxu1 }
 0x205   : > { %v979_v20 = vadd.f32 %v2252_v53, %v978_v19  ;;  %1759 = vmatprep.mubr.f32.mxu0 %v1015_v14 }
 0x206   : > { %1760 = vmatmul.mubr.f32.gmra.mrb[44].mxu0 %v1016_v17  ;;  %v1018_v22 = vmax.f32 %v984_v18, 0.0 }
 0x207   : > { %v1017_v21 = vmax.f32 %v979_v20, 0.0 }
 0x209   : > { %1762 = vmatprep.mubr.f32.mxu0 %v1017_v21 }
 0x20a   : > { %1763 = vmatmul.mubr.f32.gmra.mrb[46].mxu0 %v1018_v22 }
 0x2a1   : > { %v1719_v24 = vpop.f32.mrb[16].mxu0 }
 0x2a2   : > { %v1114_v25 = vadd.f32 %v1719_v24, %v2292_v23  ;;  %v1108_v27 = vpop.f32.mrb[17].mxu0 }
 0x2a3   : > { %v1109_v53 = vadd.f32 %v2292_v23, %v1108_v27 }
 0x2a4   : > { %1268 = vst [vmem:[%s2296_s9 + $0x8] sm:$0xff] %v1114_v25 }
 0x2a5   : > { %1267 = vst [vmem:[%s2296_s9] sm:$0xff] %v1109_v53  ;;  %v1722_v28 = vpop.f32.mrb[18].mxu0 }
 0x2a6   : > { %v1124_v29 = vadd.f32 %v1722_v28, %v2292_v23  ;;  %v1118_v26 = vpop.f32.mrb[19].mxu0 }
 0x2a7   : > { %v1119_v30 = vadd.f32 %v2292_v23, %v1118_v26 }
 0x2a8   : > { %1270 = vst [vmem:[%s2296_s9 + $0x18] sm:$0xff] %v1124_v29 }
 0x2a9   : > { %1269 = vst [vmem:[%s2296_s9 + $0x10] sm:$0xff] %v1119_v30  ;;  %v1725_v31 = vpop.f32.mrb[20].mxu0 }
 0x2aa   : > { %v1134_v32 = vadd.f32 %v1725_v31, %v2292_v23  ;;  %v1128_v33 = vpop.f32.mrb[21].mxu0 }
 0x2ab   : > { %v1129_v35 = vadd.f32 %v2292_v23, %v1128_v33 }
 0x2ac   : > { %1272 = vst [vmem:[%s2296_s9 + $0x28] sm:$0xff] %v1134_v32 }
 0x2ad   : > { %1271 = vst [vmem:[%s2296_s9 + $0x20] sm:$0xff] %v1129_v35  ;;  %v1728_v34 = vpop.f32.mrb[22].mxu0 }
 0x2ae   : > { %v1144_v36 = vadd.f32 %v1728_v34, %v2292_v23  ;;  %v1138_v37 = vpop.f32.mrb[23].mxu0 }
 0x2af   : > { %v1139_v38 = vadd.f32 %v2292_v23, %v1138_v37 }
 0x2b0   : > { %1274 = vst [vmem:[%s2296_s9 + $0x38] sm:$0xff] %v1144_v36 }
 0x2b1   : > { %1273 = vst [vmem:[%s2296_s9 + $0x30] sm:$0xff] %v1139_v38  ;;  %v1731_v39 = vpop.f32.mrb[24].mxu0 }
 0x2b2   : > { %v1154_v40 = vadd.f32 %v1731_v39, %v2292_v23  ;;  %v1148_v41 = vpop.f32.mrb[25].mxu0 }
 0x2b3   : > { %v1149_v42 = vadd.f32 %v2292_v23, %v1148_v41 }
 0x2b4   : > { %1276 = vst [vmem:[%s2296_s9 + $0x48] sm:$0xff] %v1154_v40 }
 0x2b5   : > { %1275 = vst [vmem:[%s2296_s9 + $0x40] sm:$0xff] %v1149_v42  ;;  %v1734_v43 = vpop.f32.mrb[26].mxu0 }
 0x2b6   : > { %v1164_v44 = vadd.f32 %v1734_v43, %v2292_v23  ;;  %v1158_v45 = vpop.f32.mrb[27].mxu0 }
 0x2b7   : > { %v1159_v46 = vadd.f32 %v2292_v23, %v1158_v45 }
 0x2b8   : > { %1278 = vst [vmem:[%s2296_s9 + $0x58] sm:$0xff] %v1164_v44 }
 0x2b9   : > { %1277 = vst [vmem:[%s2296_s9 + $0x50] sm:$0xff] %v1159_v46  ;;  %v1737_v47 = vpop.f32.mrb[28].mxu0 }
 0x2ba   : > { %v1174_v48 = vadd.f32 %v1737_v47, %v2292_v23  ;;  %v1168_v49 = vpop.f32.mrb[29].mxu0 }
 0x2bb   : > { %v1169_v50 = vadd.f32 %v2292_v23, %v1168_v49 }
 0x2bc   : > { %1280 = vst [vmem:[%s2296_s9 + $0x68] sm:$0xff] %v1174_v48 }
 0x2bd   : > { %1279 = vst [vmem:[%s2296_s9 + $0x60] sm:$0xff] %v1169_v50  ;;  %v1740_v51 = vpop.f32.mrb[30].mxu0 }
 0x2be   : > { %v1184_v52 = vadd.f32 %v1740_v51, %v2292_v23  ;;  %v1178_v16 = vpop.f32.mrb[31].mxu0 }
 0x2bf   : > { %v1179_v54 = vadd.f32 %v2292_v23, %v1178_v16 }
 0x2c0   : > { %1282 = vst [vmem:[%s2296_s9 + $0x78] sm:$0xff] %v1184_v52 }
 0x2c1   : > { %1281 = vst [vmem:[%s2296_s9 + $0x70] sm:$0xff] %v1179_v54  ;;  %v1743_v55 = vpop.f32.mrb[32].mxu0 }
 0x2c2   : > { %v1194_v56 = vadd.f32 %v1743_v55, %v2292_v23  ;;  %v1188_v57 = vpop.f32.mrb[33].mxu0 }
 0x2c3   : > { %v1189_v58 = vadd.f32 %v2292_v23, %v1188_v57 }
 0x2c4   : > { %1284 = vst [vmem:[%s2296_s9 + $0x88] sm:$0xff] %v1194_v56 }
 0x2c5   : > { %1283 = vst [vmem:[%s2296_s9 + $0x80] sm:$0xff] %v1189_v58  ;;  %v1746_v59 = vpop.f32.mrb[34].mxu0 }
 0x2c6   : > { %v1204_v60 = vadd.f32 %v1746_v59, %v2292_v23  ;;  %v1198_v61 = vpop.f32.mrb[35].mxu0 }
 0x2c7   : > { %v1199_v62 = vadd.f32 %v2292_v23, %v1198_v61 }
 0x2c8   : > { %1286 = vst [vmem:[%s2296_s9 + $0x98] sm:$0xff] %v1204_v60 }
 0x2c9   : > { %1285 = vst [vmem:[%s2296_s9 + $0x90] sm:$0xff] %v1199_v62  ;;  %v1749_v63 = vpop.f32.mrb[36].mxu0 }
 0x2ca   : > { %v1214_v0 = vadd.f32 %v1749_v63, %v2292_v23  ;;  %v1208_v1 = vpop.f32.mrb[37].mxu0 }
 0x2cb   : > { %v1209_v2 = vadd.f32 %v2292_v23, %v1208_v1 }
 0x2cc   : > { %1288 = vst [vmem:[%s2296_s9 + $0xa8] sm:$0xff] %v1214_v0 }
 0x2cd   : > { %1287 = vst [vmem:[%s2296_s9 + $0xa0] sm:$0xff] %v1209_v2  ;;  %v1752_v3 = vpop.f32.mrb[38].mxu0 }
 0x2ce   : > { %v1224_v4 = vadd.f32 %v1752_v3, %v2292_v23  ;;  %v1218_v5 = vpop.f32.mrb[39].mxu0 }
 0x2cf   : > { %v1219_v6 = vadd.f32 %v2292_v23, %v1218_v5 }
 0x2d0   : > { %1290 = vst [vmem:[%s2296_s9 + $0xb8] sm:$0xff] %v1224_v4 }
 0x2d1   : > { %1289 = vst [vmem:[%s2296_s9 + $0xb0] sm:$0xff] %v1219_v6  ;;  %v1755_v7 = vpop.f32.mrb[40].mxu0 }
 0x2d2   : > { %v1234_v8 = vadd.f32 %v1755_v7, %v2292_v23  ;;  %v1228_v9 = vpop.f32.mrb[41].mxu0 }
 0x2d3   : > { %v1229_v10 = vadd.f32 %v2292_v23, %v1228_v9 }
 0x2d4   : > { %1292 = vst [vmem:[%s2296_s9 + $0xc8] sm:$0xff] %v1234_v8 }
 0x2d5   : > { %1291 = vst [vmem:[%s2296_s9 + $0xc0] sm:$0xff] %v1229_v10  ;;  %v1758_v11 = vpop.f32.mrb[42].mxu0 }
 0x2d6   : > { %v1244_v12 = vadd.f32 %v1758_v11, %v2292_v23  ;;  %v1238_v13 = vpop.f32.mrb[43].mxu0 }
 0x2d7   : > { %v1239_v14 = vadd.f32 %v2292_v23, %v1238_v13 }
 0x2d8   : > { %1294 = vst [vmem:[%s2296_s9 + $0xd8] sm:$0xff] %v1244_v12 }
 0x2d9   : > { %1293 = vst [vmem:[%s2296_s9 + $0xd0] sm:$0xff] %v1239_v14  ;;  %v1761_v15 = vpop.f32.mrb[44].mxu0 }
 0x2da   : > { %v1254_v17 = vadd.f32 %v1761_v15, %v2292_v23  ;;  %v1248_v18 = vpop.f32.mrb[45].mxu0 }
 0x2db   : > { %v1249_v19 = vadd.f32 %v2292_v23, %v1248_v18 }
 0x2dc   : > { %1296 = vst [vmem:[%s2296_s9 + $0xe8] sm:$0xff] %v1254_v17 }
 0x2dd   : > { %1295 = vst [vmem:[%s2296_s9 + $0xe0] sm:$0xff] %v1249_v19  ;;  %v1764_v20 = vpop.f32.mrb[46].mxu0 }
 0x2de   : > { %v1264_v21 = vadd.f32 %v1764_v20, %v2292_v23  ;;  %v1258_v22 = vpop.f32.mrb[47].mxu0 }
 0x2df   : > { %v1259_v24 = vadd.f32 %v2292_v23, %v1258_v22 }
 0x2e0   : > { %1298 = vst [vmem:[%s2296_s9 + $0xf8] sm:$0xff] %v1264_v21 }
 0x2e1   : > { %1297 = vst [vmem:[%s2296_s9 + $0xf0] sm:$0xff] %v1259_v24 }
 0x2e2   : > { %1889 = shalt.err (!%p1886_p3)
}
 0x2e3   : > { %s1890_s21 = scalar_lea.hbm %s2362_s8, 4096  ;;  %s1894_s29 = scalar_lea.hbm %s2419_s7, 8192 }
 0x2e4   : > { %p1891_p4 = scmp.ne.s32.totalorder %s2362_s8, %s1890_s21  ;;  %p1895_p9 = scmp.lt.u32.totalorder %s2362_s8, %s2419_s7 }
 0x2e5   : > { %p1896_p10 = scmp.lt.u32.totalorder %s1894_s29, %s1890_s21  ;;  %p1898_p12 = scmp.lt.u32.totalorder %s1890_s21, %s2362_s8 }
 0x2e6   : > { %p1892_p7 = pnand %p1891_p4, %p2021_p5 }
 0x2e7   : > { %p1897_p11 = por %p1896_p10, %p1895_p9 }
 0x2e8   : > { %p1893_p8 = pneg %p1892_p7 }
 0x2e9   : > { %p1899_p13 = por %p1898_p12, %p1897_p11 }
 0x2eb   : > { %p1900_p0 = pnand %p1899_p13, %p1893_p8 }
 0x2ed   : > { %1903 = shalt.err (!%p1900_p0)
}
 0x2ee   : > { %s1941_s15 = smov 128   ;;  %s1942_s16 = smov 8  }
 0x2ef   : > { %1835 = dma.vmem_to_hbm [thread:$0]  (%p2021_p5), %s2364_s14, 4096, %s2362_s8, %s2371_s28, %s1941_s15, %s1941_s15, %s1942_s16  }
 0x2f0 PF: > { %p1841_p1 = scmp.ge.s32.totalorder %s1938_s27, 2  ;;  %s1328_s17 = sand.u32 1, %s1926_s24  }
 0x2f1   : > { %s1329_s18 = scalar_lea.sflag [#allocation4], %s1328_s17 }
 0x2f2   : > { %p1838_p2 = pnand %p1841_p1, %p2025_p6 }
 0x2f4   : > { %1921 = dma.done.wait (!%p1838_p2), %s1329_s18, 4096  }
 0x2f5   : > { %1923 = vsyncadd (!%p1838_p2), %s1329_s18, 4294963200  ;;  %p17_p3 = scmp.ge.s32.totalorder %s2008_s30, 4   ;;  %s2422_s24 = smov %s1930_s25 }
 0x2f6   : > { %s2423_s25 = smov %s1934_s26  ;;  %s2424_s26 = smov %s2019_s10 }
 0x2f7   : > { %s2425_s27 = smov %s2008_s30  ;;  %19 = sbr.rel (!%p17_p3) target bundleno = 3 (0x3), region = 83 }
 0x2fe   :  { %1334 = vsyncpa [#allocation4], 1 }
 0x2ff   :  { %1336 = vsyncpa [#allocation4 + $0x1], 1 }

</bundles_post_ra>
